<compile_context>
chip_gen: v5e
topology: v5e:2x2
jax: 0.10.0
libtpu: 0.0.40
codegen_flags: <defaults>
</compile_context>

<pallas_src>
import jax
import jax.numpy as jnp
from jax.experimental import pallas as pl
from jax.experimental.pallas import tpu as pltpu

HIDDEN = 32   # hidden_size
VOCAB = 64    # output_size
SEQ = 8       # encoder sequence length
STEPS = 4     # decode steps fused into one kernel call


def _round_up(x, m):
    return (x + m - 1) // m * m


def bahdanau_decode_kernel(
    tok_ref,        # SMEM (T,) int32   token ids (teacher forcing)
    h0_ref,         # (1, H)            initial h
    c0_ref,         # (1, H)            initial c
    enc_ref,        # (S, H)            encoder outputs (squeezed)
    embt_ref,       # (V, H)            embedding table
    wenc_ref,       # (H, H)            w_fc_encoder.T
    whp_ref,        # (H, 5H)           [w_hh.T | w_fc_hidden.T]   (128-lane aligned)
    wih_ref,        # (2H, 4H)          w_ih.T (contiguous: emb rows then ctx rows)
    wcls_ref,       # (H, V)            w_cls.T
    misc_ref,       # (1, Lm)           [b_ih+b_hh | b_cls | pad | attn_v] (aligned)
    logp_ref,       # out (T, V)        per-step log-softmax over vocab
    attn_ref,       # out (T, S)        per-step attention weights
    h_out_ref,      # out (1, H)        final h
    c_out_ref,      # out (1, H)        final c
    h_all_ref,      # scratch (T, H)    per-step h_new for the deferred classifier
):
    H = h0_ref.shape[1]
    V = logp_ref.shape[1]
    T = logp_ref.shape[0]
    G = 4 * H
    v_off = _round_up(G + V, 128)        # attn_v start lane (128-aligned)

    # ---- Resident tensors: one HBM->VMEM DMA each for the whole decode ----
    enc = enc_ref[...]                               # (S, H)
    embt = embt_ref[...]                             # (V, H)
    whp = whp_ref[...]                               # (H, 5H)
    wih = wih_ref[...]                               # (2H, 4H)
    b_gates = misc_ref[:, 0:G]                       # (1, 4H)  b_ih + b_hh (pre-summed)
    b_cls = misc_ref[:, G:G + V]                     # (1, V)
    v_row = misc_ref[:, v_off:v_off + H]             # (1, H)   self.weight

    # ---- One-time pre-computation, hoisted off the per-step recurrence ----
    # fc_encoder(encoder_outputs) is constant across decode steps.
    enc_proj = jnp.dot(enc, wenc_ref[...], preferred_element_type=jnp.float32)  # (S, H)
    iota_v = jax.lax.broadcasted_iota(jnp.int32, (1, V), 1)                      # emb gather

    def step(t, carry):
        h, c = carry                                              # (1, H) each

        # Embedding gather as a tiny one-hot matmul (independent of h/c, so it
        # overlaps with the serial recurrence chain in the unrolled loop).
        tok = tok_ref[t]
        onehot = (iota_v == tok).astype(jnp.float32)              # (1, V)
        emb = jnp.dot(onehot, embt, preferred_element_type=jnp.float32)  # (1, H)
        # TODO(synk): training-mode dropout (p=0.1) on `emb` omitted (eval semantics).

        # Fused h-contraction: gate partial (1,4H) and attention hidden
        # projection (1,H) from ONE MXU push/pop; both slices are 128-aligned.
        hp = jnp.dot(h, whp, preferred_element_type=jnp.float32)  # (1, 5H)
        gates_h = hp[:, 0:G]                                      # (1, 4H)
        hid_proj = hp[:, G:G + H]                                 # (1, H)

        # Bahdanau attention, lane-dense along S.
        x = jnp.tanh(hid_proj + enc_proj)                         # (S, H)
        scores = jax.lax.dot_general(
            v_row, x, (((1,), (1,)), ((), ())),
            preferred_element_type=jnp.float32)                   # (1, S)
        m = jnp.max(scores, axis=-1, keepdims=True)
        e = jnp.exp(scores - m)
        attn = e / jnp.sum(e, axis=-1, keepdims=True)             # exact softmax
        context = jnp.dot(attn, enc, preferred_element_type=jnp.float32)  # (1, H)

        # LSTM step (PyTorch gate order i, f, g, o): a single [emb | context]
        # lane concat (XLU) feeds ONE contiguous w_ih.T dot.
        lstm_in = jnp.concatenate([emb, context], axis=1)         # (1, 2H)
        gates = (jnp.dot(lstm_in, wih, preferred_element_type=jnp.float32)
                 + gates_h + b_gates)                             # (1, 4H)
        i_g = jax.nn.sigmoid(gates[:, 0 * H:1 * H])
        f_g = jax.nn.sigmoid(gates[:, 1 * H:2 * H])
        g_g = jnp.tanh(gates[:, 2 * H:3 * H])
        o_g = jax.nn.sigmoid(gates[:, 3 * H:4 * H])
        c_new = f_g * c + i_g * g_g
        h_new = o_g * jnp.tanh(c_new)

        # Classifier deferred out of the recurrence: only stash h_new / attn.
        h_all_ref[pl.ds(t, 1), :] = h_new
        attn_ref[pl.ds(t, 1), :] = attn
        return (h_new, c_new)

    # unroll=True is fine at T=4; cap the unroll factor if STEPS grows large.
    h_fin, c_fin = jax.lax.fori_loop(
        0, T, step, (h0_ref[...], c0_ref[...]), unroll=True)
    h_out_ref[...] = h_fin
    c_out_ref[...] = c_fin

    # Deferred classifier + log-softmax: one (T,H)x(H,V) GEMM + one batched
    # reduction over all T steps, written back with a single full-block store.
    logits = (jnp.dot(h_all_ref[...], wcls_ref[...],
                      preferred_element_type=jnp.float32) + b_cls)        # (T, V)
    lmax = jnp.max(logits, axis=-1, keepdims=True)
    shifted = logits - lmax
    lse = jnp.log(jnp.sum(jnp.exp(shifted), axis=-1, keepdims=True))
    logp_ref[...] = shifted - lse


def init_params(key, hidden_size=HIDDEN, output_size=VOCAB):
    """Deterministic synthetic parameters in the PyTorch module's layout."""
    ks = jax.random.split(key, 9)
    s = 0.1
    return dict(
        embedding=jax.random.normal(ks[0], (output_size, hidden_size), jnp.float32) * s,
        w_fc_hidden=jax.random.normal(ks[1], (hidden_size, hidden_size), jnp.float32) * s,
        w_fc_encoder=jax.random.normal(ks[2], (hidden_size, hidden_size), jnp.float32) * s,
        attn_v=jax.random.normal(ks[3], (1, hidden_size), jnp.float32) * s,      # self.weight
        w_ih=jax.random.normal(ks[4], (4 * hidden_size, 2 * hidden_size), jnp.float32) * s,
        w_hh=jax.random.normal(ks[5], (4 * hidden_size, hidden_size), jnp.float32) * s,
        b_ih=jax.random.normal(ks[6], (4 * hidden_size,), jnp.float32) * s,
        b_hh=jax.random.normal(ks[7], (4 * hidden_size,), jnp.float32) * s,
        w_cls=jax.random.normal(ks[8], (output_size, hidden_size), jnp.float32) * s,
        b_cls=jnp.zeros((output_size,), jnp.float32),
    )
    # NOTE: attn_combine from __init__ is unused in forward(), so it is omitted.


def pack_params(params):
    """One-time packing: pre-transpose & coalesce weights so the kernel sees
    lane-aligned resident blocks (no per-call .T / per-step re-layout)."""
    H = params["w_fc_hidden"].shape[0]
    V = params["w_cls"].shape[0]
    G = 4 * H
    # h-contraction pack: [w_hh.T (0:4H) | w_fc_hidden.T (4H:5H)]; 4H is a
    # multiple of 128 here, so both result slices start on a lane-tile boundary.
    w_h_pack = jnp.concatenate([params["w_hh"].T, params["w_fc_hidden"].T], axis=1)
    # misc row: [b_ih+b_hh (0:4H) | b_cls (4H:4H+V) | zero pad | attn_v], with
    # attn_v padded up to the next 128-lane boundary.
    v_off = _round_up(G + V, 128)
    misc = jnp.concatenate([
        (params["b_ih"] + params["b_hh"]).reshape(1, G),
        params["b_cls"].reshape(1, V),
        jnp.zeros((1, v_off - (G + V)), jnp.float32),
        params["attn_v"].reshape(1, H),
    ], axis=1)
    return dict(
        emb_table=params["embedding"],          # (V, H)
        w_enc_t=params["w_fc_encoder"].T,       # (H, H)
        w_h_pack=w_h_pack,                      # (H, 5H)
        w_ih_t=params["w_ih"].T,                # (2H, 4H) contiguous
        w_cls_t=params["w_cls"].T,              # (H, V)
        misc=misc,                              # (1, round_up(4H+V,128)+H)
    )


@jax.jit
def bahdanau_decode(packed, tokens, hidden, encoder_outputs):
    """Teacher-forced decode of len(tokens) BahdanauDecoder.forward steps,
    fused into a single Pallas kernel call (weights stay VMEM-resident).
    tokens: (T,) int32; hidden: (h, c) each (1, 1, H); encoder_outputs: (S, 1, H).
    Returns (log_probs (T, V), (h, c) each (1, 1, H), attn_weights (T, S)).
    T == 1 reproduces exactly one call of the PyTorch forward."""
    h0, c0 = hidden
    H = h0.shape[-1]
    enc = encoder_outputs.reshape(-1, H)                     # .squeeze() -> (S, H), metadata only
    S = enc.shape[0]
    T = tokens.shape[0]
    V = packed["emb_table"].shape[0]

    smem = pl.BlockSpec(memory_space=pltpu.MemorySpace.SMEM)
    vmem = pl.BlockSpec(memory_space=pltpu.MemorySpace.VMEM)
    logp, attn, h_out, c_out = pl.pallas_call(
        bahdanau_decode_kernel,
        out_shape=(
            jax.ShapeDtypeStruct((T, V), jnp.float32),
            jax.ShapeDtypeStruct((T, S), jnp.float32),
            jax.ShapeDtypeStruct((1, H), jnp.float32),
            jax.ShapeDtypeStruct((1, H), jnp.float32),
        ),
        in_specs=[smem] + [vmem] * 9,
        out_specs=(vmem, vmem, vmem, vmem),
        scratch_shapes=[pltpu.VMEM((T, H), jnp.float32)],
    )(tokens, h0.reshape(1, H), c0.reshape(1, H), enc,
      packed["emb_table"], packed["w_enc_t"], packed["w_h_pack"],
      packed["w_ih_t"], packed["w_cls_t"], packed["misc"])

    hidden_new = (h_out.reshape(1, 1, H), c_out.reshape(1, 1, H))
    return logp, hidden_new, attn


def reference_decode(params, tokens, hidden, encoder_outputs):
    """Pure-JAX port of the PyTorch forward, applied step by step (for checking)."""
    h, c = hidden
    H = h.shape[-1]
    enc = encoder_outputs.reshape(-1, H)
    h = h.reshape(1, H)
    c = c.reshape(1, H)
    logps, attns = [], []
    for t in range(int(tokens.shape[0])):
        emb = params["embedding"][tokens[t]].reshape(1, H)
        x = jnp.tanh(h @ params["w_fc_hidden"].T + enc @ params["w_fc_encoder"].T)
        scores = (x @ params["attn_v"].T).reshape(1, -1)
        attn = jax.nn.softmax(scores, axis=1)
        context = attn @ enc
        lstm_in = jnp.concatenate([emb, context], axis=1)
        gates = (lstm_in @ params["w_ih"].T + params["b_ih"]
                 + h @ params["w_hh"].T + params["b_hh"])
        i_g = jax.nn.sigmoid(gates[:, :H])
        f_g = jax.nn.sigmoid(gates[:, H:2 * H])
        g_g = jnp.tanh(gates[:, 2 * H:3 * H])
        o_g = jax.nn.sigmoid(gates[:, 3 * H:])
        c = f_g * c + i_g * g_g
        h = o_g * jnp.tanh(c)
        logits = h @ params["w_cls"].T + params["b_cls"]
        logps.append(jax.nn.log_softmax(logits, axis=1))
        attns.append(attn)
    return (jnp.concatenate(logps, axis=0),
            (h.reshape(1, 1, H), c.reshape(1, 1, H)),
            jnp.concatenate(attns, axis=0))


if __name__ == "__main__":
    key = jax.random.PRNGKey(0)
    pkey, dkey = jax.random.split(key)
    params = init_params(pkey)
    packed = pack_params(params)          # one-time packing (not per decode)

    tokens = jnp.array([3, 17, 42, 5], dtype=jnp.int32)          # STEPS token ids
    h0 = jax.random.normal(jax.random.fold_in(dkey, 0), (1, 1, HIDDEN), jnp.float32)
    c0 = jax.random.normal(jax.random.fold_in(dkey, 1), (1, 1, HIDDEN), jnp.float32)
    enc_out = jax.random.normal(jax.random.fold_in(dkey, 2), (SEQ, 1, HIDDEN), jnp.float32)

    logp, hidden_new, attn_w = bahdanau_decode(packed, tokens, (h0, c0), enc_out)
    jax.block_until_ready((logp, hidden_new, attn_w))

    assert logp.shape == (STEPS, VOCAB)
    assert hidden_new[0].shape == (1, 1, HIDDEN) and hidden_new[1].shape == (1, 1, HIDDEN)
    assert attn_w.shape == (STEPS, SEQ)

    # Check against the step-by-step pure-JAX port of the PyTorch forward.
    ref_logp, ref_hidden, ref_attn = reference_decode(params, tokens, (h0, c0), enc_out)
    tol = 5e-3   # covers MXU f32 pass-precision differences vs. XLA default matmul
    assert float(jnp.max(jnp.abs(logp - ref_logp))) < tol
    assert float(jnp.max(jnp.abs(attn_w - ref_attn))) < tol
    assert float(jnp.max(jnp.abs(hidden_new[0] - ref_hidden[0]))) < tol
    assert float(jnp.max(jnp.abs(hidden_new[1] - ref_hidden[1]))) < tol

    print("KERNEL_OK")
</pallas_src>

<mosaic_0001>
module attributes {stable_mosaic.version = 11 : i64} {
  func.func @bahdanau_decode_kernel(%arg0: memref<4xi32, #tpu.memory_space<smem>>, %arg1: memref<1x32xf32, #tpu.memory_space<vmem>>, %arg2: memref<1x32xf32, #tpu.memory_space<vmem>>, %arg3: memref<8x32xf32, #tpu.memory_space<vmem>>, %arg4: memref<64x32xf32, #tpu.memory_space<vmem>>, %arg5: memref<32x32xf32, #tpu.memory_space<vmem>>, %arg6: memref<32x160xf32, #tpu.memory_space<vmem>>, %arg7: memref<64x128xf32, #tpu.memory_space<vmem>>, %arg8: memref<32x64xf32, #tpu.memory_space<vmem>>, %arg9: memref<1x288xf32, #tpu.memory_space<vmem>>, %arg10: memref<4x64xf32, #tpu.memory_space<vmem>>, %arg11: memref<4x8xf32, #tpu.memory_space<vmem>>, %arg12: memref<1x32xf32, #tpu.memory_space<vmem>>, %arg13: memref<1x32xf32, #tpu.memory_space<vmem>>, %arg14: memref<4x32xf32, #tpu.memory_space<vmem>>) attributes {dimension_semantics = [], scalar_prefetch = 0 : i64, scratch_operands = 1 : i64, tpu.core_type = #tpu.core_type<tc>} {
    %c0 = arith.constant 0 : index
    %c0_0 = arith.constant 0 : index
    %0 = vector.load %arg3[%c0, %c0_0] : memref<8x32xf32, #tpu.memory_space<vmem>>, vector<8x32xf32>
    %c0_1 = arith.constant 0 : index
    %c0_2 = arith.constant 0 : index
    %1 = vector.load %arg4[%c0_1, %c0_2] : memref<64x32xf32, #tpu.memory_space<vmem>>, vector<64x32xf32>
    %c0_3 = arith.constant 0 : index
    %c0_4 = arith.constant 0 : index
    %2 = vector.load %arg6[%c0_3, %c0_4] : memref<32x160xf32, #tpu.memory_space<vmem>>, vector<32x160xf32>
    %c0_5 = arith.constant 0 : index
    %c0_6 = arith.constant 0 : index
    %3 = vector.load %arg7[%c0_5, %c0_6] : memref<64x128xf32, #tpu.memory_space<vmem>>, vector<64x128xf32>
    %c0_7 = arith.constant 0 : index
    %c0_8 = arith.constant 0 : index
    %4 = vector.load %arg9[%c0_7, %c0_8] : memref<1x288xf32, #tpu.memory_space<vmem>>, vector<1x128xf32>
    %c0_9 = arith.constant 0 : index
    %c128 = arith.constant 128 : index
    %5 = vector.load %arg9[%c0_9, %c128] : memref<1x288xf32, #tpu.memory_space<vmem>>, vector<1x64xf32>
    %c0_10 = arith.constant 0 : index
    %c256 = arith.constant 256 : index
    %6 = vector.load %arg9[%c0_10, %c256] : memref<1x288xf32, #tpu.memory_space<vmem>>, vector<1x32xf32>
    %c0_11 = arith.constant 0 : index
    %c0_12 = arith.constant 0 : index
    %7 = vector.load %arg5[%c0_11, %c0_12] : memref<32x32xf32, #tpu.memory_space<vmem>>, vector<32x32xf32>
    %cst = arith.constant dense<0.000000e+00> : vector<8x32xf32>
    %8 = tpu.matmul %0, %7, %cst {dimension_numbers = #tpu.dot_dimension_numbers<[1], [0], [0], [1], [0, 0, 1, 1], [], []>} : vector<8x32xf32>, vector<32x32xf32>, vector<8x32xf32> -> vector<8x32xf32>
    %9 = tpu.iota {dimensions = array<i32: 1>} : vector<1x64xi32>
    %c0_13 = arith.constant 0 : index
    %c0_14 = arith.constant 0 : index
    %10 = vector.load %arg1[%c0_13, %c0_14] : memref<1x32xf32, #tpu.memory_space<vmem>>, vector<1x32xf32>
    %c0_15 = arith.constant 0 : index
    %c0_16 = arith.constant 0 : index
    %11 = vector.load %arg2[%c0_15, %c0_16] : memref<1x32xf32, #tpu.memory_space<vmem>>, vector<1x32xf32>
    %c0_i32 = arith.constant 0 : i32
    %12 = arith.index_cast %c0_i32 : i32 to index
    %13 = memref.load %arg0[%12] : memref<4xi32, #tpu.memory_space<smem>>
    %14 = vector.broadcast %13 : i32 to vector<1x64xi32>
    %15 = arith.cmpi eq, %9, %14 : vector<1x64xi32>
    %16 = arith.extui %15 : vector<1x64xi1> to vector<1x64xi32>
    %17 = arith.sitofp %16 : vector<1x64xi32> to vector<1x64xf32>
    %cst_17 = arith.constant dense<0.000000e+00> : vector<1x32xf32>
    %18 = tpu.matmul %17, %1, %cst_17 {dimension_numbers = #tpu.dot_dimension_numbers<[1], [0], [0], [1], [0, 0, 1, 1], [], []>} : vector<1x64xf32>, vector<64x32xf32>, vector<1x32xf32> -> vector<1x32xf32>
    %cst_18 = arith.constant dense<0.000000e+00> : vector<1x160xf32>
    %19 = tpu.matmul %10, %2, %cst_18 {dimension_numbers = #tpu.dot_dimension_numbers<[1], [0], [0], [1], [0, 0, 1, 1], [], []>} : vector<1x32xf32>, vector<32x160xf32>, vector<1x160xf32> -> vector<1x160xf32>
    %20 = vector.extract_strided_slice %19 {offsets = [0, 0], sizes = [1, 128], strides = [1, 1]} : vector<1x160xf32> to vector<1x128xf32>
    %21 = vector.extract_strided_slice %19 {offsets = [0, 128], sizes = [1, 32], strides = [1, 1]} : vector<1x160xf32> to vector<1x32xf32>
    %22 = vector.broadcast %21 : vector<1x32xf32> to vector<8x32xf32>
    %23 = arith.addf %22, %8 : vector<8x32xf32>
    %24 = math.tanh %23 : vector<8x32xf32>
    %cst_19 = arith.constant dense<0.000000e+00> : vector<1x8xf32>
    %25 = tpu.matmul %6, %24, %cst_19 {dimension_numbers = #tpu.dot_dimension_numbers<[1], [1], [0], [0], [0, 0, 1, 0], [], []>} : vector<1x32xf32>, vector<8x32xf32>, vector<1x8xf32> -> vector<1x8xf32>
    %cst_20 = arith.constant dense<0xFF800000> : vector<1xf32>
    %26 = vector.multi_reduction <maximumf>, %25, %cst_20 [1] : vector<1x8xf32> to vector<1xf32>
    %27 = vector.shape_cast %26 : vector<1xf32> to vector<1x1xf32>
    %28 = vector.broadcast %27 : vector<1x1xf32> to vector<1x8xf32>
    %29 = arith.subf %25, %28 : vector<1x8xf32>
    %30 = math.exp %29 : vector<1x8xf32>
    %cst_21 = arith.constant dense<0.000000e+00> : vector<1xf32>
    %31 = vector.multi_reduction <add>, %30, %cst_21 [1] : vector<1x8xf32> to vector<1xf32>
    %32 = vector.shape_cast %31 : vector<1xf32> to vector<1x1xf32>
    %33 = vector.broadcast %32 : vector<1x1xf32> to vector<1x8xf32>
    %34 = arith.divf %30, %33 : vector<1x8xf32>
    %cst_22 = arith.constant dense<0.000000e+00> : vector<1x32xf32>
    %35 = tpu.matmul %34, %0, %cst_22 {dimension_numbers = #tpu.dot_dimension_numbers<[1], [0], [0], [1], [0, 0, 1, 1], [], []>} : vector<1x8xf32>, vector<8x32xf32>, vector<1x32xf32> -> vector<1x32xf32>
    %36 = tpu.concatenate %18, %35 in 1 : vector<1x32xf32>, vector<1x32xf32> -> vector<1x64xf32>
    %cst_23 = arith.constant dense<0.000000e+00> : vector<1x128xf32>
    %37 = tpu.matmul %36, %3, %cst_23 {dimension_numbers = #tpu.dot_dimension_numbers<[1], [0], [0], [1], [0, 0, 1, 1], [], []>} : vector<1x64xf32>, vector<64x128xf32>, vector<1x128xf32> -> vector<1x128xf32>
    %38 = arith.addf %37, %20 : vector<1x128xf32>
    %39 = arith.addf %38, %4 : vector<1x128xf32>
    %40 = vector.extract_strided_slice %39 {offsets = [0, 0], sizes = [1, 32], strides = [1, 1]} : vector<1x128xf32> to vector<1x32xf32>
    %41 = arith.negf %40 : vector<1x32xf32>
    %42 = math.exp %41 : vector<1x32xf32>
    %cst_24 = arith.constant 1.000000e+00 : f32
    %43 = vector.broadcast %cst_24 : f32 to vector<1x32xf32>
    %44 = arith.addf %43, %42 : vector<1x32xf32>
    %45 = arith.divf %43, %44 : vector<1x32xf32>
    %46 = vector.extract_strided_slice %39 {offsets = [0, 32], sizes = [1, 32], strides = [1, 1]} : vector<1x128xf32> to vector<1x32xf32>
    %47 = arith.negf %46 : vector<1x32xf32>
    %48 = math.exp %47 : vector<1x32xf32>
    %cst_25 = arith.constant 1.000000e+00 : f32
    %49 = vector.broadcast %cst_25 : f32 to vector<1x32xf32>
    %50 = arith.addf %49, %48 : vector<1x32xf32>
    %51 = arith.divf %49, %50 : vector<1x32xf32>
    %52 = vector.extract_strided_slice %39 {offsets = [0, 64], sizes = [1, 32], strides = [1, 1]} : vector<1x128xf32> to vector<1x32xf32>
    %53 = math.tanh %52 : vector<1x32xf32>
    %54 = vector.extract_strided_slice %39 {offsets = [0, 96], sizes = [1, 32], strides = [1, 1]} : vector<1x128xf32> to vector<1x32xf32>
    %55 = arith.negf %54 : vector<1x32xf32>
    %56 = math.exp %55 : vector<1x32xf32>
    %cst_26 = arith.constant 1.000000e+00 : f32
    %57 = vector.broadcast %cst_26 : f32 to vector<1x32xf32>
    %58 = arith.addf %57, %56 : vector<1x32xf32>
    %59 = arith.divf %57, %58 : vector<1x32xf32>
    %60 = arith.mulf %51, %11 : vector<1x32xf32>
    %61 = arith.mulf %45, %53 : vector<1x32xf32>
    %62 = arith.addf %60, %61 : vector<1x32xf32>
    %63 = math.tanh %62 : vector<1x32xf32>
    %64 = arith.mulf %59, %63 : vector<1x32xf32>
    %65 = arith.index_cast %c0_i32 : i32 to index
    %c0_27 = arith.constant 0 : index
    %66 = vector.load %arg14[%65, %c0_27] : memref<4x32xf32, #tpu.memory_space<vmem>>, vector<1x32xf32>
    tpu.vector_store %arg14[%65, %c0_27], %64 {strides = array<i32>} : memref<4x32xf32, #tpu.memory_space<vmem>>, vector<1x32xf32>,
    %67 = arith.index_cast %c0_i32 : i32 to index
    %c0_28 = arith.constant 0 : index
    %68 = vector.load %arg11[%67, %c0_28] : memref<4x8xf32, #tpu.memory_space<vmem>>, vector<1x8xf32>
    tpu.vector_store %arg11[%67, %c0_28], %34 {strides = array<i32>} : memref<4x8xf32, #tpu.memory_space<vmem>>, vector<1x8xf32>,
    %c1_i32 = arith.constant 1 : i32
    %69 = arith.index_cast %c1_i32 : i32 to index
    %70 = memref.load %arg0[%69] : memref<4xi32, #tpu.memory_space<smem>>
    %71 = vector.broadcast %70 : i32 to vector<1x64xi32>
    %72 = arith.cmpi eq, %9, %71 : vector<1x64xi32>
    %73 = arith.extui %72 : vector<1x64xi1> to vector<1x64xi32>
    %74 = arith.sitofp %73 : vector<1x64xi32> to vector<1x64xf32>
    %cst_29 = arith.constant dense<0.000000e+00> : vector<1x32xf32>
    %75 = tpu.matmul %74, %1, %cst_29 {dimension_numbers = #tpu.dot_dimension_numbers<[1], [0], [0], [1], [0, 0, 1, 1], [], []>} : vector<1x64xf32>, vector<64x32xf32>, vector<1x32xf32> -> vector<1x32xf32>
    %cst_30 = arith.constant dense<0.000000e+00> : vector<1x160xf32>
    %76 = tpu.matmul %64, %2, %cst_30 {dimension_numbers = #tpu.dot_dimension_numbers<[1], [0], [0], [1], [0, 0, 1, 1], [], []>} : vector<1x32xf32>, vector<32x160xf32>, vector<1x160xf32> -> vector<1x160xf32>
    %77 = vector.extract_strided_slice %76 {offsets = [0, 0], sizes = [1, 128], strides = [1, 1]} : vector<1x160xf32> to vector<1x128xf32>
    %78 = vector.extract_strided_slice %76 {offsets = [0, 128], sizes = [1, 32], strides = [1, 1]} : vector<1x160xf32> to vector<1x32xf32>
    %79 = vector.broadcast %78 : vector<1x32xf32> to vector<8x32xf32>
    %80 = arith.addf %79, %8 : vector<8x32xf32>
    %81 = math.tanh %80 : vector<8x32xf32>
    %cst_31 = arith.constant dense<0.000000e+00> : vector<1x8xf32>
    %82 = tpu.matmul %6, %81, %cst_31 {dimension_numbers = #tpu.dot_dimension_numbers<[1], [1], [0], [0], [0, 0, 1, 0], [], []>} : vector<1x32xf32>, vector<8x32xf32>, vector<1x8xf32> -> vector<1x8xf32>
    %cst_32 = arith.constant dense<0xFF800000> : vector<1xf32>
    %83 = vector.multi_reduction <maximumf>, %82, %cst_32 [1] : vector<1x8xf32> to vector<1xf32>
    %84 = vector.shape_cast %83 : vector<1xf32> to vector<1x1xf32>
    %85 = vector.broadcast %84 : vector<1x1xf32> to vector<1x8xf32>
    %86 = arith.subf %82, %85 : vector<1x8xf32>
    %87 = math.exp %86 : vector<1x8xf32>
    %cst_33 = arith.constant dense<0.000000e+00> : vector<1xf32>
    %88 = vector.multi_reduction <add>, %87, %cst_33 [1] : vector<1x8xf32> to vector<1xf32>
    %89 = vector.shape_cast %88 : vector<1xf32> to vector<1x1xf32>
    %90 = vector.broadcast %89 : vector<1x1xf32> to vector<1x8xf32>
    %91 = arith.divf %87, %90 : vector<1x8xf32>
    %cst_34 = arith.constant dense<0.000000e+00> : vector<1x32xf32>
    %92 = tpu.matmul %91, %0, %cst_34 {dimension_numbers = #tpu.dot_dimension_numbers<[1], [0], [0], [1], [0, 0, 1, 1], [], []>} : vector<1x8xf32>, vector<8x32xf32>, vector<1x32xf32> -> vector<1x32xf32>
    %93 = tpu.concatenate %75, %92 in 1 : vector<1x32xf32>, vector<1x32xf32> -> vector<1x64xf32>
    %cst_35 = arith.constant dense<0.000000e+00> : vector<1x128xf32>
    %94 = tpu.matmul %93, %3, %cst_35 {dimension_numbers = #tpu.dot_dimension_numbers<[1], [0], [0], [1], [0, 0, 1, 1], [], []>} : vector<1x64xf32>, vector<64x128xf32>, vector<1x128xf32> -> vector<1x128xf32>
    %95 = arith.addf %94, %77 : vector<1x128xf32>
    %96 = arith.addf %95, %4 : vector<1x128xf32>
    %97 = vector.extract_strided_slice %96 {offsets = [0, 0], sizes = [1, 32], strides = [1, 1]} : vector<1x128xf32> to vector<1x32xf32>
    %98 = arith.negf %97 : vector<1x32xf32>
    %99 = math.exp %98 : vector<1x32xf32>
    %cst_36 = arith.constant 1.000000e+00 : f32
    %100 = vector.broadcast %cst_36 : f32 to vector<1x32xf32>
    %101 = arith.addf %100, %99 : vector<1x32xf32>
    %102 = arith.divf %100, %101 : vector<1x32xf32>
    %103 = vector.extract_strided_slice %96 {offsets = [0, 32], sizes = [1, 32], strides = [1, 1]} : vector<1x128xf32> to vector<1x32xf32>
    %104 = arith.negf %103 : vector<1x32xf32>
    %105 = math.exp %104 : vector<1x32xf32>
    %cst_37 = arith.constant 1.000000e+00 : f32
    %106 = vector.broadcast %cst_37 : f32 to vector<1x32xf32>
    %107 = arith.addf %106, %105 : vector<1x32xf32>
    %108 = arith.divf %106, %107 : vector<1x32xf32>
    %109 = vector.extract_strided_slice %96 {offsets = [0, 64], sizes = [1, 32], strides = [1, 1]} : vector<1x128xf32> to vector<1x32xf32>
    %110 = math.tanh %109 : vector<1x32xf32>
    %111 = vector.extract_strided_slice %96 {offsets = [0, 96], sizes = [1, 32], strides = [1, 1]} : vector<1x128xf32> to vector<1x32xf32>
    %112 = arith.negf %111 : vector<1x32xf32>
    %113 = math.exp %112 : vector<1x32xf32>
    %cst_38 = arith.constant 1.000000e+00 : f32
    %114 = vector.broadcast %cst_38 : f32 to vector<1x32xf32>
    %115 = arith.addf %114, %113 : vector<1x32xf32>
    %116 = arith.divf %114, %115 : vector<1x32xf32>
    %117 = arith.mulf %108, %62 : vector<1x32xf32>
    %118 = arith.mulf %102, %110 : vector<1x32xf32>
    %119 = arith.addf %117, %118 : vector<1x32xf32>
    %120 = math.tanh %119 : vector<1x32xf32>
    %121 = arith.mulf %116, %120 : vector<1x32xf32>
    %122 = arith.index_cast %c1_i32 : i32 to index
    %c0_39 = arith.constant 0 : index
    %123 = vector.load %arg14[%122, %c0_39] : memref<4x32xf32, #tpu.memory_space<vmem>>, vector<1x32xf32>
    tpu.vector_store %arg14[%122, %c0_39], %121 {strides = array<i32>} : memref<4x32xf32, #tpu.memory_space<vmem>>, vector<1x32xf32>,
    %124 = arith.index_cast %c1_i32 : i32 to index
    %c0_40 = arith.constant 0 : index
    %125 = vector.load %arg11[%124, %c0_40] : memref<4x8xf32, #tpu.memory_space<vmem>>, vector<1x8xf32>
    tpu.vector_store %arg11[%124, %c0_40], %91 {strides = array<i32>} : memref<4x8xf32, #tpu.memory_space<vmem>>, vector<1x8xf32>,
    %c2_i32 = arith.constant 2 : i32
    %126 = arith.index_cast %c2_i32 : i32 to index
    %127 = memref.load %arg0[%126] : memref<4xi32, #tpu.memory_space<smem>>
    %128 = vector.broadcast %127 : i32 to vector<1x64xi32>
    %129 = arith.cmpi eq, %9, %128 : vector<1x64xi32>
    %130 = arith.extui %129 : vector<1x64xi1> to vector<1x64xi32>
    %131 = arith.sitofp %130 : vector<1x64xi32> to vector<1x64xf32>
    %cst_41 = arith.constant dense<0.000000e+00> : vector<1x32xf32>
    %132 = tpu.matmul %131, %1, %cst_41 {dimension_numbers = #tpu.dot_dimension_numbers<[1], [0], [0], [1], [0, 0, 1, 1], [], []>} : vector<1x64xf32>, vector<64x32xf32>, vector<1x32xf32> -> vector<1x32xf32>
    %cst_42 = arith.constant dense<0.000000e+00> : vector<1x160xf32>
    %133 = tpu.matmul %121, %2, %cst_42 {dimension_numbers = #tpu.dot_dimension_numbers<[1], [0], [0], [1], [0, 0, 1, 1], [], []>} : vector<1x32xf32>, vector<32x160xf32>, vector<1x160xf32> -> vector<1x160xf32>
    %134 = vector.extract_strided_slice %133 {offsets = [0, 0], sizes = [1, 128], strides = [1, 1]} : vector<1x160xf32> to vector<1x128xf32>
    %135 = vector.extract_strided_slice %133 {offsets = [0, 128], sizes = [1, 32], strides = [1, 1]} : vector<1x160xf32> to vector<1x32xf32>
    %136 = vector.broadcast %135 : vector<1x32xf32> to vector<8x32xf32>
    %137 = arith.addf %136, %8 : vector<8x32xf32>
    %138 = math.tanh %137 : vector<8x32xf32>
    %cst_43 = arith.constant dense<0.000000e+00> : vector<1x8xf32>
    %139 = tpu.matmul %6, %138, %cst_43 {dimension_numbers = #tpu.dot_dimension_numbers<[1], [1], [0], [0], [0, 0, 1, 0], [], []>} : vector<1x32xf32>, vector<8x32xf32>, vector<1x8xf32> -> vector<1x8xf32>
    %cst_44 = arith.constant dense<0xFF800000> : vector<1xf32>
    %140 = vector.multi_reduction <maximumf>, %139, %cst_44 [1] : vector<1x8xf32> to vector<1xf32>
    %141 = vector.shape_cast %140 : vector<1xf32> to vector<1x1xf32>
    %142 = vector.broadcast %141 : vector<1x1xf32> to vector<1x8xf32>
    %143 = arith.subf %139, %142 : vector<1x8xf32>
    %144 = math.exp %143 : vector<1x8xf32>
    %cst_45 = arith.constant dense<0.000000e+00> : vector<1xf32>
    %145 = vector.multi_reduction <add>, %144, %cst_45 [1] : vector<1x8xf32> to vector<1xf32>
    %146 = vector.shape_cast %145 : vector<1xf32> to vector<1x1xf32>
    %147 = vector.broadcast %146 : vector<1x1xf32> to vector<1x8xf32>
    %148 = arith.divf %144, %147 : vector<1x8xf32>
    %cst_46 = arith.constant dense<0.000000e+00> : vector<1x32xf32>
    %149 = tpu.matmul %148, %0, %cst_46 {dimension_numbers = #tpu.dot_dimension_numbers<[1], [0], [0], [1], [0, 0, 1, 1], [], []>} : vector<1x8xf32>, vector<8x32xf32>, vector<1x32xf32> -> vector<1x32xf32>
    %150 = tpu.concatenate %132, %149 in 1 : vector<1x32xf32>, vector<1x32xf32> -> vector<1x64xf32>
    %cst_47 = arith.constant dense<0.000000e+00> : vector<1x128xf32>
    %151 = tpu.matmul %150, %3, %cst_47 {dimension_numbers = #tpu.dot_dimension_numbers<[1], [0], [0], [1], [0, 0, 1, 1], [], []>} : vector<1x64xf32>, vector<64x128xf32>, vector<1x128xf32> -> vector<1x128xf32>
    %152 = arith.addf %151, %134 : vector<1x128xf32>
    %153 = arith.addf %152, %4 : vector<1x128xf32>
    %154 = vector.extract_strided_slice %153 {offsets = [0, 0], sizes = [1, 32], strides = [1, 1]} : vector<1x128xf32> to vector<1x32xf32>
    %155 = arith.negf %154 : vector<1x32xf32>
    %156 = math.exp %155 : vector<1x32xf32>
    %cst_48 = arith.constant 1.000000e+00 : f32
    %157 = vector.broadcast %cst_48 : f32 to vector<1x32xf32>
    %158 = arith.addf %157, %156 : vector<1x32xf32>
    %159 = arith.divf %157, %158 : vector<1x32xf32>
    %160 = vector.extract_strided_slice %153 {offsets = [0, 32], sizes = [1, 32], strides = [1, 1]} : vector<1x128xf32> to vector<1x32xf32>
    %161 = arith.negf %160 : vector<1x32xf32>
    %162 = math.exp %161 : vector<1x32xf32>
    %cst_49 = arith.constant 1.000000e+00 : f32
    %163 = vector.broadcast %cst_49 : f32 to vector<1x32xf32>
    %164 = arith.addf %163, %162 : vector<1x32xf32>
    %165 = arith.divf %163, %164 : vector<1x32xf32>
    %166 = vector.extract_strided_slice %153 {offsets = [0, 64], sizes = [1, 32], strides = [1, 1]} : vector<1x128xf32> to vector<1x32xf32>
    %167 = math.tanh %166 : vector<1x32xf32>
    %168 = vector.extract_strided_slice %153 {offsets = [0, 96], sizes = [1, 32], strides = [1, 1]} : vector<1x128xf32> to vector<1x32xf32>
    %169 = arith.negf %168 : vector<1x32xf32>
    %170 = math.exp %169 : vector<1x32xf32>
    %cst_50 = arith.constant 1.000000e+00 : f32
    %171 = vector.broadcast %cst_50 : f32 to vector<1x32xf32>
    %172 = arith.addf %171, %170 : vector<1x32xf32>
    %173 = arith.divf %171, %172 : vector<1x32xf32>
    %174 = arith.mulf %165, %119 : vector<1x32xf32>
    %175 = arith.mulf %159, %167 : vector<1x32xf32>
    %176 = arith.addf %174, %175 : vector<1x32xf32>
    %177 = math.tanh %176 : vector<1x32xf32>
    %178 = arith.mulf %173, %177 : vector<1x32xf32>
    %179 = arith.index_cast %c2_i32 : i32 to index
    %c0_51 = arith.constant 0 : index
    %180 = vector.load %arg14[%179, %c0_51] : memref<4x32xf32, #tpu.memory_space<vmem>>, vector<1x32xf32>
    tpu.vector_store %arg14[%179, %c0_51], %178 {strides = array<i32>} : memref<4x32xf32, #tpu.memory_space<vmem>>, vector<1x32xf32>,
    %181 = arith.index_cast %c2_i32 : i32 to index
    %c0_52 = arith.constant 0 : index
    %182 = vector.load %arg11[%181, %c0_52] : memref<4x8xf32, #tpu.memory_space<vmem>>, vector<1x8xf32>
    tpu.vector_store %arg11[%181, %c0_52], %148 {strides = array<i32>} : memref<4x8xf32, #tpu.memory_space<vmem>>, vector<1x8xf32>,
    %c3_i32 = arith.constant 3 : i32
    %183 = arith.index_cast %c3_i32 : i32 to index
    %184 = memref.load %arg0[%183] : memref<4xi32, #tpu.memory_space<smem>>
    %185 = vector.broadcast %184 : i32 to vector<1x64xi32>
    %186 = arith.cmpi eq, %9, %185 : vector<1x64xi32>
    %187 = arith.extui %186 : vector<1x64xi1> to vector<1x64xi32>
    %188 = arith.sitofp %187 : vector<1x64xi32> to vector<1x64xf32>
    %cst_53 = arith.constant dense<0.000000e+00> : vector<1x32xf32>
    %189 = tpu.matmul %188, %1, %cst_53 {dimension_numbers = #tpu.dot_dimension_numbers<[1], [0], [0], [1], [0, 0, 1, 1], [], []>} : vector<1x64xf32>, vector<64x32xf32>, vector<1x32xf32> -> vector<1x32xf32>
    %cst_54 = arith.constant dense<0.000000e+00> : vector<1x160xf32>
    %190 = tpu.matmul %178, %2, %cst_54 {dimension_numbers = #tpu.dot_dimension_numbers<[1], [0], [0], [1], [0, 0, 1, 1], [], []>} : vector<1x32xf32>, vector<32x160xf32>, vector<1x160xf32> -> vector<1x160xf32>
    %191 = vector.extract_strided_slice %190 {offsets = [0, 0], sizes = [1, 128], strides = [1, 1]} : vector<1x160xf32> to vector<1x128xf32>
    %192 = vector.extract_strided_slice %190 {offsets = [0, 128], sizes = [1, 32], strides = [1, 1]} : vector<1x160xf32> to vector<1x32xf32>
    %193 = vector.broadcast %192 : vector<1x32xf32> to vector<8x32xf32>
    %194 = arith.addf %193, %8 : vector<8x32xf32>
    %195 = math.tanh %194 : vector<8x32xf32>
    %cst_55 = arith.constant dense<0.000000e+00> : vector<1x8xf32>
    %196 = tpu.matmul %6, %195, %cst_55 {dimension_numbers = #tpu.dot_dimension_numbers<[1], [1], [0], [0], [0, 0, 1, 0], [], []>} : vector<1x32xf32>, vector<8x32xf32>, vector<1x8xf32> -> vector<1x8xf32>
    %cst_56 = arith.constant dense<0xFF800000> : vector<1xf32>
    %197 = vector.multi_reduction <maximumf>, %196, %cst_56 [1] : vector<1x8xf32> to vector<1xf32>
    %198 = vector.shape_cast %197 : vector<1xf32> to vector<1x1xf32>
    %199 = vector.broadcast %198 : vector<1x1xf32> to vector<1x8xf32>
    %200 = arith.subf %196, %199 : vector<1x8xf32>
    %201 = math.exp %200 : vector<1x8xf32>
    %cst_57 = arith.constant dense<0.000000e+00> : vector<1xf32>
    %202 = vector.multi_reduction <add>, %201, %cst_57 [1] : vector<1x8xf32> to vector<1xf32>
    %203 = vector.shape_cast %202 : vector<1xf32> to vector<1x1xf32>
    %204 = vector.broadcast %203 : vector<1x1xf32> to vector<1x8xf32>
    %205 = arith.divf %201, %204 : vector<1x8xf32>
    %cst_58 = arith.constant dense<0.000000e+00> : vector<1x32xf32>
    %206 = tpu.matmul %205, %0, %cst_58 {dimension_numbers = #tpu.dot_dimension_numbers<[1], [0], [0], [1], [0, 0, 1, 1], [], []>} : vector<1x8xf32>, vector<8x32xf32>, vector<1x32xf32> -> vector<1x32xf32>
    %207 = tpu.concatenate %189, %206 in 1 : vector<1x32xf32>, vector<1x32xf32> -> vector<1x64xf32>
    %cst_59 = arith.constant dense<0.000000e+00> : vector<1x128xf32>
    %208 = tpu.matmul %207, %3, %cst_59 {dimension_numbers = #tpu.dot_dimension_numbers<[1], [0], [0], [1], [0, 0, 1, 1], [], []>} : vector<1x64xf32>, vector<64x128xf32>, vector<1x128xf32> -> vector<1x128xf32>
    %209 = arith.addf %208, %191 : vector<1x128xf32>
    %210 = arith.addf %209, %4 : vector<1x128xf32>
    %211 = vector.extract_strided_slice %210 {offsets = [0, 0], sizes = [1, 32], strides = [1, 1]} : vector<1x128xf32> to vector<1x32xf32>
    %212 = arith.negf %211 : vector<1x32xf32>
    %213 = math.exp %212 : vector<1x32xf32>
    %cst_60 = arith.constant 1.000000e+00 : f32
    %214 = vector.broadcast %cst_60 : f32 to vector<1x32xf32>
    %215 = arith.addf %214, %213 : vector<1x32xf32>
    %216 = arith.divf %214, %215 : vector<1x32xf32>
    %217 = vector.extract_strided_slice %210 {offsets = [0, 32], sizes = [1, 32], strides = [1, 1]} : vector<1x128xf32> to vector<1x32xf32>
    %218 = arith.negf %217 : vector<1x32xf32>
    %219 = math.exp %218 : vector<1x32xf32>
    %cst_61 = arith.constant 1.000000e+00 : f32
    %220 = vector.broadcast %cst_61 : f32 to vector<1x32xf32>
    %221 = arith.addf %220, %219 : vector<1x32xf32>
    %222 = arith.divf %220, %221 : vector<1x32xf32>
    %223 = vector.extract_strided_slice %210 {offsets = [0, 64], sizes = [1, 32], strides = [1, 1]} : vector<1x128xf32> to vector<1x32xf32>
    %224 = math.tanh %223 : vector<1x32xf32>
    %225 = vector.extract_strided_slice %210 {offsets = [0, 96], sizes = [1, 32], strides = [1, 1]} : vector<1x128xf32> to vector<1x32xf32>
    %226 = arith.negf %225 : vector<1x32xf32>
    %227 = math.exp %226 : vector<1x32xf32>
    %cst_62 = arith.constant 1.000000e+00 : f32
    %228 = vector.broadcast %cst_62 : f32 to vector<1x32xf32>
    %229 = arith.addf %228, %227 : vector<1x32xf32>
    %230 = arith.divf %228, %229 : vector<1x32xf32>
    %231 = arith.mulf %222, %176 : vector<1x32xf32>
    %232 = arith.mulf %216, %224 : vector<1x32xf32>
    %233 = arith.addf %231, %232 : vector<1x32xf32>
    %234 = math.tanh %233 : vector<1x32xf32>
    %235 = arith.mulf %230, %234 : vector<1x32xf32>
    %236 = arith.index_cast %c3_i32 : i32 to index
    %c0_63 = arith.constant 0 : index
    %237 = vector.load %arg14[%236, %c0_63] : memref<4x32xf32, #tpu.memory_space<vmem>>, vector<1x32xf32>
    tpu.vector_store %arg14[%236, %c0_63], %235 {strides = array<i32>} : memref<4x32xf32, #tpu.memory_space<vmem>>, vector<1x32xf32>,
    %238 = arith.index_cast %c3_i32 : i32 to index
    %c0_64 = arith.constant 0 : index
    %239 = vector.load %arg11[%238, %c0_64] : memref<4x8xf32, #tpu.memory_space<vmem>>, vector<1x8xf32>
    tpu.vector_store %arg11[%238, %c0_64], %205 {strides = array<i32>} : memref<4x8xf32, #tpu.memory_space<vmem>>, vector<1x8xf32>,
    %c4_i32 = arith.constant 4 : i32
    %c0_65 = arith.constant 0 : index
    %c0_66 = arith.constant 0 : index
    %240 = vector.load %arg12[%c0_65, %c0_66] : memref<1x32xf32, #tpu.memory_space<vmem>>, vector<1x32xf32>
    tpu.vector_store %arg12[%c0_65, %c0_66], %235 {strides = array<i32>} : memref<1x32xf32, #tpu.memory_space<vmem>>, vector<1x32xf32>,
    %c0_67 = arith.constant 0 : index
    %c0_68 = arith.constant 0 : index
    %241 = vector.load %arg13[%c0_67, %c0_68] : memref<1x32xf32, #tpu.memory_space<vmem>>, vector<1x32xf32>
    tpu.vector_store %arg13[%c0_67, %c0_68], %233 {strides = array<i32>} : memref<1x32xf32, #tpu.memory_space<vmem>>, vector<1x32xf32>,
    %c0_69 = arith.constant 0 : index
    %c0_70 = arith.constant 0 : index
    %242 = vector.load %arg14[%c0_69, %c0_70] : memref<4x32xf32, #tpu.memory_space<vmem>>, vector<4x32xf32>
    %c0_71 = arith.constant 0 : index
    %c0_72 = arith.constant 0 : index
    %243 = vector.load %arg8[%c0_71, %c0_72] : memref<32x64xf32, #tpu.memory_space<vmem>>, vector<32x64xf32>
    %cst_73 = arith.constant dense<0.000000e+00> : vector<4x64xf32>
    %244 = tpu.matmul %242, %243, %cst_73 {dimension_numbers = #tpu.dot_dimension_numbers<[1], [0], [0], [1], [0, 0, 1, 1], [], []>} : vector<4x32xf32>, vector<32x64xf32>, vector<4x64xf32> -> vector<4x64xf32>
    %245 = vector.broadcast %5 : vector<1x64xf32> to vector<4x64xf32>
    %246 = arith.addf %244, %245 : vector<4x64xf32>
    %cst_74 = arith.constant dense<0xFF800000> : vector<4xf32>
    %247 = vector.multi_reduction <maximumf>, %246, %cst_74 [1] : vector<4x64xf32> to vector<4xf32>
    %248 = vector.shape_cast %247 : vector<4xf32> to vector<4x1xf32>
    %249 = vector.broadcast %248 : vector<4x1xf32> to vector<4x64xf32>
    %250 = arith.subf %246, %249 : vector<4x64xf32>
    %251 = math.exp %250 : vector<4x64xf32>
    %cst_75 = arith.constant dense<0.000000e+00> : vector<4xf32>
    %252 = vector.multi_reduction <add>, %251, %cst_75 [1] : vector<4x64xf32> to vector<4xf32>
    %253 = vector.shape_cast %252 : vector<4xf32> to vector<4x1xf32>
    %254 = math.log %253 : vector<4x1xf32>
    %255 = vector.broadcast %254 : vector<4x1xf32> to vector<4x64xf32>
    %256 = arith.subf %250, %255 : vector<4x64xf32>
    %c0_76 = arith.constant 0 : index
    %c0_77 = arith.constant 0 : index
    %257 = vector.load %arg10[%c0_76, %c0_77] : memref<4x64xf32, #tpu.memory_space<vmem>>, vector<4x64xf32>
    tpu.vector_store %arg10[%c0_76, %c0_77], %256 {strides = array<i32>} : memref<4x64xf32, #tpu.memory_space<vmem>>, vector<4x64xf32>,
    return
  }
}

</mosaic_0001>

<bundles_post_ra>
// kernel: bahdanau_decode.1
= control target key start
LH: loop header
LB: loop body
LE: loop exit
PB: predicated region body
PF: predicated region fallthrough
CT: control target
= control target key end

     0   :  { %19 = vsyncpa [#allocation6], 0  ;;  %s1989_s0 = inlined_call_operand.vmem [shape: s32[4], index: 0, kind: input, shape index: {}]   ;;  %s1990_s1 = inlined_call_operand.hbm [shape: f32[1,32], index: 1, kind: input, shape index: {}]   ;;  %s1991_s2 = inlined_call_operand.hbm [shape: f32[1,32], index: 2, kind: input, shape index: {}]   ;;  %s1992_s3 = inlined_call_operand.vmem [shape: f32[8,32], index: 3, kind: input, shape index: {}]   ;;  %s1993_s4 = inlined_call_operand.vmem [shape: f32[64,32], index: 4, kind: input, shape index: {}]   ;;  %s1994_s5 = inlined_call_operand.vmem [shape: f32[32,32], index: 5, kind: input, shape index: {}]   ;;  %s1995_s6 = inlined_call_operand.vmem [shape: f32[32,160], index: 6, kind: input, shape index: {}]   ;;  %s1996_s7 = inlined_call_operand.hbm [shape: f32[64,128], index: 7, kind: input, shape index: {}]   ;;  %s1997_s8 = inlined_call_operand.hbm [shape: f32[32,64], index: 8, kind: input, shape index: {}]   ;;  %s1998_s9 = inlined_call_operand.hbm [shape: f32[1,288], index: 9, kind: input, shape index: {}]   ;;  %s1999_s10 = inlined_call_operand.hbm [shape: f32[4,64], index: 10, kind: output, shape index: {0}]   ;;  %s2000_s11 = inlined_call_operand.hbm [shape: f32[4,8], index: 11, kind: output, shape index: {1}]   ;;  %s2001_s12 = inlined_call_operand.hbm [shape: f32[1,32], index: 12, kind: output, shape index: {2}]   ;;  %s2002_s13 = inlined_call_operand.hbm [shape: f32[1,32], index: 13, kind: output, shape index: {3}]  }
   0x1   :  { %20 = vsyncpa [#allocation4], 0 }
   0x2   :  { %21 = vsyncpa [#allocation9], 0 }
   0x3   :  { %22 = vsyncpa [#allocation12], 0 }
   0x4   :  { %23 = vsyncpa [#allocation5], 0 }
   0x5   :  { %24 = vsyncpa [#allocation16], 0  ;;  %s51_s27 = sshll.u32 %s1991_s2, 4  ;;  %s52_s27 = int_to_ptr.hbm [resolvable:$true] %s51_s27 }
   0x6   :  { %25 = vsyncpa [#allocation19], 0  ;;  %s1539_s28 = smov [#allocation8]   ;;  %s82_s15 = sshll.u32 %s1997_s8, 4  ;;  %s83_s15 = int_to_ptr.hbm [resolvable:$true] %s82_s15 }
   0x7   :  { %s53_s29 = sshll.u32 %s1539_s28, 4  ;;  %s1540_s16 = smov [#allocation11]   ;;  %s54_s29 = int_to_ptr.vmem [resolvable:$true] %s53_s29 }
   0x8   :  { %56 = dma.hbm_to_vmem [thread:$0]  %s52_s27, 16, %s54_s29, [#allocation9]  }
   0x9   :  { %s84_s17 = sshll.u32 %s1540_s16, 4  ;;  %s31_s20 = sshll.u32 %s1989_s0, 4  ;;  %s85_s17 = int_to_ptr.vmem [resolvable:$true] %s84_s17  ;;  %s32_s20 = int_to_ptr.vmem [resolvable:$true] %s31_s20 }
   0xa   :  { %s1541_s2 = smov 128   ;;  %s1542_s21 = smov 8  }
   0xb   :  { %90 = dma.hbm_to_vmem [thread:$0]  %s83_s15, 512, %s85_s17, [#allocation12], %s1541_s2, %s1541_s2, %s1542_s21  }
   0xc   :  { %s40_s24 = sshll.u32 %s1990_s1, 4  ;;  %s1543_s25 = smov [#allocation3]   ;;  %s41_s24 = int_to_ptr.hbm [resolvable:$true] %s40_s24 }
   0xd   :  { %34 = dma.vmem_to_smem %s32_s20, 16, %s1543_s25, [#allocation6]  }
   0xe   :  { %s1544_s8 = smov [#allocation7]   ;;  %s69_s29 = sshll.u32 %s1996_s7, 4  ;;  %s70_s29 = int_to_ptr.hbm [resolvable:$true] %s69_s29 }
   0xf   :  { %s42_s26 = sshll.u32 %s1544_s8, 4  ;;  %s96_s14 = sshll.u32 %s1998_s9, 4  ;;  %s43_s26 = int_to_ptr.vmem [resolvable:$true] %s42_s26  ;;  %s97_s14 = int_to_ptr.hbm [resolvable:$true] %s96_s14 }
  0x10   :  { %45 = dma.hbm_to_vmem [thread:$0]  %s41_s24, 16, %s43_s26, [#allocation4]  }
  0x11   :  { %s1545_s15 = smov [#allocation10]   ;;  %s1546_s1 = smov [#allocation13]  }
  0x12   :  { %s71_s16 = sshll.u32 %s1545_s15, 4  ;;  %s98_s17 = sshll.u32 %s1546_s1, 4  ;;  %s72_s16 = int_to_ptr.vmem [resolvable:$true] %s71_s16  ;;  %s99_s17 = int_to_ptr.vmem [resolvable:$true] %s98_s17 }
  0x13   :  { %77 = dma.hbm_to_vmem [thread:$0]  %s70_s29, 1024, %s72_s16, [#allocation9], %s1541_s2, %s1541_s2, %s1542_s21  }
  0x14   :  { %101 = dma.hbm_to_vmem [thread:$0]  %s97_s14, 48, %s99_s17, [#allocation12]  }
  0x15   :  { %1525 = dma.done.wait [#allocation6], 16  }
  0x16   :  { %1526 = vsyncadd [#allocation6], 4294967280 }
  0x17   :  { %1527 = dma.done.wait [#allocation4], 16  }
  0x18   :  { %1528 = vsyncadd [#allocation4], 4294967280 }
  0x19   :  { %1529 = dma.done.wait [#allocation9], 1040  }
  0x1a   :  { %1530 = vsyncadd [#allocation9], 4294966256 }
  0x1b   :  { %1531 = dma.done.wait [#allocation12], 560  }
  0x1c   :  { %1532 = vsyncadd [#allocation12], 4294966736 }
  0x1d   :  { %126 = sfence }
  0x1e   :  { %v1646_v0 = vld [vmem:[%s1995_s6 + $0x38] sm:$0xff]  ;;  %v1651_v1 = vld [vmem:[%s1995_s6 + $0x28] sm:$0xff]  ;;  %v157_v4 = vld [vmem:[%s1994_s5 + $0x10] sm:$0xff]  ;;  %vm159_vm0 = vcmask 261120   ;;  %vm288_vm1 = vcmask 57344   ;;  %s187_s9 = sld [smem:[#allocation3]]  ;;  %v183_v30 = vlaneseq }
  0x1f   :  { %251 = vmatpush.msra.mxu3 %v1646_v0  ;;  %v158_v2 = vld [vmem:[%s1994_s5 + $0x18] sm:$0xff]  ;;  %v156_v5 = vld [vmem:[%s1994_s5 + $0x8] sm:$0xff]  ;;  %v185_v7 = vld [vmem:[#allocation7] sm:$0x1]  ;;  %v1547_v39 = vmov 0.0   ;;  %vm192_vm3 = vcmask 523264  }
  0x20   :  { %v1660_v3 = vld [vmem:[%s1995_s6 + $0x18] sm:$0xff]  ;;  %175 = vmatpush.msra.mxu0 %v158_v2  ;;  %v1672_v6 = vld [vmem:[%s1995_s6 + $0x8] sm:$0xff]  ;;  %v155_v8 = vld [vmem:[%s1994_s5] sm:$0xff]  ;;  %v1761_v33 = vand.u32 127, %v183_v30  ;;  %vm313_vm8 = vcmask 64512   ;;  %s1549_s30 = smov 64  }
  0x21   :  { %252 = vmatpush.msra.mxu3 %v1651_v1  ;;  %v1681_v9 = vld [vmem:[%s1992_s3] sm:$0xff]  ;;  %v1691_v15 = vld [vmem:[#allocation13 + $0x2] sm:$0x1]  ;;  %v1703_v23 = vld [vmem:[%s1995_s6 + $0x30] sm:$0xff]  ;;  %vm412_vm13 = vcmask 253952   ;;  %s1188_s3 = sld [smem:[#allocation3 + $0x1]] }
  0x22   :  { %176 = vmatpush.msra.mxu0 %v157_v4  ;;  %231 = vmatpush.msra.mxu2 %v1703_v23  ;;  %v1709_v24 = vld [vmem:[%s1995_s6 + $0x20] sm:$0xff]  ;;  %v1715_v25 = vld [vmem:[%s1995_s6 + $0x10] sm:$0xff]  ;;  %v1732_v27 = vld [vmem:[%s1993_s4 + $0x38] sm:$0xff]  ;;  %s1198_s5 = sld [smem:[#allocation3 + $0x2]]  ;;  %s1550_s15 = smov 96  }
  0x23   :  { %253 = vmatpush.msra.mxu3 %v1660_v3  ;;  %v1721_v26 = vld [vmem:[%s1995_s6] sm:$0xff]  ;;  %v1737_v28 = vld [vmem:[%s1993_s4 + $0x30] sm:$0xff]  ;;  %204 = vmatpush.msra.mxu1 %v1732_v27  ;;  %v1745_v29 = vld [vmem:[%s1993_s4 + $0x28] sm:$0xff]  ;;  %s1208_s14 = sld [smem:[#allocation3 + $0x3]]  ;;  %s1551_s16 = smov [#allocation15]  }
  0x24   :  { %177 = vmatpush.msra.mxu0 %v156_v5  ;;  %232 = vmatpush.msra.mxu2 %v1709_v24  ;;  %v1752_v31 = vld [vmem:[%s1993_s4 + $0x20] sm:$0xff]  ;;  %v1759_v32 = vld [vmem:[%s1993_s4 + $0x18] sm:$0xff]  ;;  %v188_v34 = vstv %s187_s9  ;;  %v1768_v35 = vld [vmem:[%s1993_s4 + $0x10] sm:$0xff]  ;;  %s1127_s1 = sshll.u32 %s1551_s16, 4  ;;  %s1129_s9 = sshll.u32 %s2000_s11, 4  ;;  %s1128_s1 = int_to_ptr.vmem [resolvable:$true] %s1127_s1  ;;  %s1130_s9 = int_to_ptr.hbm [resolvable:$true] %s1129_s9 }
  0x25   :  { %254 = vmatpush.msra.mxu3 %v1672_v6  ;;  %205 = vmatpush.msra.mxu1 %v1737_v28  ;;  %v1775_v36 = vld [vmem:[%s1993_s4 + $0x8] sm:$0xff]  ;;  %vm189_vm2 = vcmp.eq.s32.totalorder %v1761_v33, %v188_v34  ;;  %v1783_v38 = vld [vmem:[%s1993_s4] sm:$0xff]  ;;  %v1809_v53 = vld [vmem:[#allocation10 + $0x30] sm:$0xff]  ;;  %s1548_s4 = smov 32   ;;  %s1552_s18 = smov [#allocation17]  }
  0x26   :  { %1182 = vmatmul.msk.f32.vlgmr.msra.gmra.mxu3 %vm159_vm0, %v185_v7  ;;  %178 = vmatpush.msra.mxu0 %v155_v8  ;;  %v1179_v40 = vsel %vm189_vm2, 1.0, %v1547_v39  ;;  %v1807_v52 = vld [vmem:[#allocation10 + $0x38] sm:$0xff]  ;;  %v1812_v54 = vld [vmem:[#allocation10 + $0x28] sm:$0xff]  ;;  %v1815_v55 = vld [vmem:[#allocation10 + $0x20] sm:$0xff]  ;;  %s1138_s19 = sshll.u32 %s1552_s18, 4  ;;  %s1140_s2 = sshll.u32 %s2001_s12, 4  ;;  %s1139_s19 = int_to_ptr.vmem [resolvable:$true] %s1138_s19  ;;  %s1141_s2 = int_to_ptr.hbm [resolvable:$true] %s1140_s2 }
  0x27   :  { %1178 = vmatmul.msk.f32.vlgmr.msra.gmra.mxu0 %vm159_vm0, %v1681_v9  ;;  %233 = vmatpush.msra.mxu2 %v1715_v25  ;;  %v1818_v56 = vld [vmem:[#allocation10 + $0x18] sm:$0xff]  ;;  %v1821_v57 = vld [vmem:[#allocation10 + $0x10] sm:$0xff]  ;;  %v1824_v58 = vld [vmem:[#allocation10 + $0x8] sm:$0xff]  ;;  %s1151_s23 = sshll.u32 %s2002_s13, 4  ;;  %s1553_s11 = smov [#allocation18]   ;;  %s1152_s23 = int_to_ptr.hbm [resolvable:$true] %s1151_s23 }
  0x28   :  { %206 = vmatpush.msra.mxu1 %v1745_v29  ;;  %353 = vmatpush.msrb.mxu3 %v1807_v52  ;;  %v1829_v61 = vld [vmem:[#allocation10] sm:$0xff]  ;;  %v1235_v62 = vld [vmem:[#allocation8] ss:$0 sm:$0xff]  ;;  %s1149_s24 = sshll.u32 %s1553_s11, 4  ;;  %s1554_s25 = smov [#allocation14]   ;;  %s1150_s24 = int_to_ptr.vmem [resolvable:$true] %s1149_s24 }
  0x29   :  { %234 = vmatpush.msra.mxu2 %v1721_v26  ;;  %388 = vrot.lane.b32.xlu2 %v1235_v62, %s1548_s4  ;;  %v1851_v5 = vld [vmem:[#allocation13] sm:$0x1]  ;;  %s1116_s12 = sshll.u32 %s1554_s25, 4  ;;  %s1118_s27 = sshll.u32 %s1999_s10, 4  ;;  %s1117_s12 = int_to_ptr.vmem [resolvable:$true] %s1116_s12  ;;  %s1119_s27 = int_to_ptr.hbm [resolvable:$true] %s1118_s27 }
  0x2a   :  { %1181 = vmatmul.msk.f32.vlgmr.msra.gmra.mxu2 %vm159_vm0, %v185_v7  ;;  %207 = vmatpush.msra.mxu1 %v1752_v31 }
  0x2b   :  { %332 = vmatpush.msrb.mxu2 %v1681_v9  ;;  %354 = vmatpush.msrb.mxu3 %v1809_v53 }
  0x2c   :  { %208 = vmatpush.msra.mxu1 %v1759_v32 }
  0x2d   :  { %477 = vmatpush.msra.mxu2 %v1646_v0  ;;  %355 = vmatpush.msrb.mxu3 %v1812_v54 }
  0x2e   :  { %209 = vmatpush.msra.mxu1 %v1768_v35 }
  0x2f   :  { %478 = vmatpush.msra.mxu2 %v1651_v1  ;;  %356 = vmatpush.msrb.mxu3 %v1815_v55 }
  0x30   :  { %210 = vmatpush.msra.mxu1 %v1775_v36 }
  0x31   :  { %479 = vmatpush.msra.mxu2 %v1660_v3  ;;  %357 = vmatpush.msrb.mxu3 %v1818_v56 }
  0x32   :  { %211 = vmatpush.msra.mxu1 %v1783_v38 }
  0x33   :  { %480 = vmatpush.msra.mxu2 %v1672_v6  ;;  %1180 = vmatmul.msk.f32.vlgmr.msra.gmra.mxu1 %vm192_vm3, %v1179_v40 }
  0x34   :  { %457 = vmatpush.msrb.mxu1 %v1703_v23  ;;  %358 = vmatpush.msrb.mxu3 %v1821_v57 }
  0x36   :  { %458 = vmatpush.msrb.mxu1 %v1709_v24  ;;  %359 = vmatpush.msrb.mxu3 %v1824_v58 }
  0x38   :  { %459 = vmatpush.msrb.mxu1 %v1715_v25  ;;  %360 = vmatpush.msrb.mxu3 %v1829_v61 }
  0x3a   :  { %460 = vmatpush.msrb.mxu1 %v1721_v26  ;;  %574 = vmatpush.msra.mxu3 %v1807_v52 }
  0x3c   :  { %575 = vmatpush.msra.mxu3 %v1809_v53 }
  0x3e   :  { %576 = vmatpush.msra.mxu3 %v1812_v54 }
  0x40   :  { %577 = vmatpush.msra.mxu3 %v1815_v55 }
  0x42   :  { %578 = vmatpush.msra.mxu3 %v1818_v56 }
  0x44   :  { %579 = vmatpush.msra.mxu3 %v1821_v57 }
  0x46   :  { %580 = vmatpush.msra.mxu3 %v1824_v58 }
  0x48   :  { %581 = vmatpush.msra.mxu3 %v1829_v61 }
  0xa4   :  { %v1687_v11 = vpop.f32.mrf.mxu0 }
  0xa9   :  { %v256_v10 = vpop.f32.mrf.mxu3 }
  0xaa   :  { %v259_v12 = vperm.slane %v256_v10, 0 }
  0xac   :  { %v260_v13 = vadd.f32 %v259_v12, %v1687_v11 }
  0xad   :  { %v236_v59 = vpop.f32.mrf.mxu2 }
  0xae   :  { %1237 = vtanh.f32 %v260_v13 }
  0xb0   :  { %v213_v63 = vpop.f32.mrf.mxu1 }
  0xb4   :  { %v1238_v14 = vpop.eup %1237 }
  0xb5   :  { %1183 = vmatpush.xpose.msk.msrb.mxu0 %vm159_vm0, %v1238_v14 }
  0xb8   :  { %1184 = vmatmul.msk.f32.vlgmr.msrb.gmra.mxu0 %vm159_vm0, %v1691_v15 }
  0xb9   :  { %431 = vmatpush.msra.mxu0 %v1732_v27 }
  0xbb   :  { %432 = vmatpush.msra.mxu0 %v1737_v28 }
  0xbd   :  { %433 = vmatpush.msra.mxu0 %v1745_v29 }
  0xbf   :  { %434 = vmatpush.msra.mxu0 %v1752_v31 }
  0xc1   :  { %435 = vmatpush.msra.mxu0 %v1759_v32 }
  0xc3   :  { %436 = vmatpush.msra.mxu0 %v1768_v35 }
  0xc5   :  { %437 = vmatpush.msra.mxu0 %v1775_v36 }
  0xc7   :  { %438 = vmatpush.msra.mxu0 %v1783_v38 }
  0xc9   :  { %646 = vmatpush.msrb.mxu0 %v1732_v27 }
  0xcb   :  { %647 = vmatpush.msrb.mxu0 %v1737_v28 }
  0xcd   :  { %648 = vmatpush.msrb.mxu0 %v1745_v29 }
  0xcf   :  { %649 = vmatpush.msrb.mxu0 %v1752_v31 }
  0xd1   :  { %650 = vmatpush.msrb.mxu0 %v1759_v32 }
  0xd3   :  { %651 = vmatpush.msrb.mxu0 %v1768_v35 }
  0xd5   :  { %652 = vmatpush.msrb.mxu0 %v1775_v36 }
  0xd7   :  { %653 = vmatpush.msrb.mxu0 %v1783_v38 }
 0x135   :  { %v285_v16 = vpop.f32.mrf.mxu0 }
 0x136   :  { %v289_v17 = vsel %vm288_vm1, %v285_v16, -inf }
 0x137   :  { %290 = vmax.xlane.f32.xlu0 %v289_v17 }
 0x1aa   :  { %v291_v18 = vpop.xlane.xlu0 %290 }
 0x1ab   :  { %v292_v19 = vsub.f32 %v285_v16, %v291_v18 }
 0x1ad   :  { %v293_v20 = vmul.f32 1.442695, %v292_v19 }
 0x1af   :  { %1239 = vpow2.f32 %v293_v20 }
 0x1b5   :  { %v1696_v21 = vpop.eup %1239 }
 0x1b6   :  { %v295_v22 = vsel %vm288_vm1, %v1696_v21, 0.0 }
 0x1b7   :  { %296 = vadd.xlane.f32.xlu0 %v295_v22 }
 0x22a   :  { %v297_v37 = vpop.xlane.xlu0 %296 }
 0x22b   :  { %1241 = vrcp.f32 %v297_v37  ;;  %v309_v44 = vand.u32 2147483648, %v297_v37  ;;  %v307_v46 = vand.u32 2147483647, %v297_v37  ;;  %vm303_vm5 = vweird.f32 %v297_v37 }
 0x22d   :  { %v310_v48 = vor.u32 1.1754944e-38, %v309_v44  ;;  %vm308_vm7 = vcmp.eq.f32.partialorder %v307_v46, 8.507059e+37 }
 0x231   :  { %v1242_v41 = vpop.eup %1241 }
 0x232   :  { %v299_v42 = vmul.f32 %v1242_v41, %v297_v37  ;;  %vm304_vm4 = vweird.f32 %v1242_v41 }
 0x233   :  { %vm305_vm6 = vmor %vm303_vm5, %vm304_vm4 }
 0x234   :  { %v300_v43 = vsub.f32 1.0, %v299_v42 }
 0x236   :  { %v301_v45 = vmul.f32 %v1242_v41, %v300_v43  ;;  %v389_v43 = vpop.permute.xlu2 %388 }
 0x238   :  { %v302_v47 = vadd.f32 %v1242_v41, %v301_v45 }
 0x23a   :  { %v306_v49 = vsel %vm305_vm6, %v1242_v41, %v302_v47 }
 0x23b   :  { %v311_v50 = vsel %vm308_vm7, %v310_v48, %v306_v49 }
 0x23c   :  { %v312_v51 = vmul.f32 %v1696_v21, %v311_v50 }
 0x23e   :  { %1185 = vmatmul.msk.f32.vlgmr.msrb.gmra.mxu2 %vm313_vm8, %v312_v51  ;;  %414 = vst.msk [vmem:[#allocation15] sm:$0x1] %vm288_vm1, %v312_v51 }
 0x23f   :  { %553 = vmatpush.msrb.mxu2 %v1681_v9 }
 0x2c1   :  { %v334_v60 = vpop.f32.mrf.mxu2 }
 0x2c2   :  { %338 = vrot.lane.b32.xlu1 %v334_v60, %s1548_s4 }
 0x334   :  { %v339_v2 = vpop.permute.xlu1 %338 }
 0x335   :  { %v341_v4 = vsel %vm159_vm0, %v213_v63, %v339_v2 }
 0x336   :  { %1186 = vmatmul.msk.f32.vlgmr.msrb.gmra.mxu3 %vm192_vm3, %v341_v4 }
 0x337   :  { %789 = vmatpush.msrb.mxu3 %v1807_v52 }
 0x339   :  { %790 = vmatpush.msrb.mxu3 %v1809_v53 }
 0x33b   :  { %791 = vmatpush.msrb.mxu3 %v1812_v54 }
 0x33d   :  { %792 = vmatpush.msrb.mxu3 %v1815_v55 }
 0x33f   :  { %793 = vmatpush.msrb.mxu3 %v1818_v56 }
 0x341   :  { %794 = vmatpush.msrb.mxu3 %v1821_v57 }
 0x343   :  { %795 = vmatpush.msrb.mxu3 %v1824_v58 }
 0x345   :  { %796 = vmatpush.msrb.mxu3 %v1829_v61 }
 0x3b9   :  { %v362_v7 = vpop.f32.mrf.mxu3 }
 0x3ba   :  { %v363_v8 = vadd.f32 %v362_v7, %v236_v59 }
 0x3bc   :  { %v365_v10 = vadd.f32 %v363_v8, %v1851_v5 }
 0x3be   :  { %1243 = vtanh.f32 %v365_v10  ;;  %v1187_v13 = vmul.f32 -1.442695, %v365_v10 }
 0x3c0   :  { %1245 = vpow2.f32 %v1187_v13 }
 0x3c4   :  { %v1244_v12 = vpop.eup %1243 }
 0x3c5   :  { %393 = vrot.lane.b32.xlu1 %v1244_v12, %s1549_s30 }
 0x3c6   :  { %v1246_v14 = vpop.eup %1245 }
 0x3c7   :  { %v369_v16 = vadd.f32 1.0, %v1246_v14  ;;  %v416_v14 = vstv %s1188_s3 }
 0x3c8   :  { %vm417_vm14 = vcmp.eq.s32.totalorder %v1761_v33, %v416_v14 }
 0x3c9   :  { %1247 = vrcp.f32 %v369_v16  ;;  %v381_v22 = vand.u32 2147483648, %v369_v16  ;;  %vm375_vm10 = vweird.f32 %v369_v16  ;;  %v379_v30 = vand.u32 2147483647, %v369_v16 }
 0x3cb   :  { %v382_v37 = vor.u32 1.1754944e-38, %v381_v22  ;;  %vm380_vm12 = vcmp.eq.f32.partialorder %v379_v30, 8.507059e+37 }
 0x3cf   :  { %v1248_v17 = vpop.eup %1247 }
 0x3d0   :  { %v371_v18 = vmul.f32 %v1248_v17, %v369_v16  ;;  %vm376_vm9 = vweird.f32 %v1248_v17  ;;  %v1189_v16 = vsel %vm417_vm14, 1.0, %v1547_v39 }
 0x3d1   :  { %vm377_vm11 = vmor %vm375_vm10, %vm376_vm9  ;;  %1190 = vmatmul.msk.f32.vlgmr.msra.gmra.mxu0 %vm192_vm3, %v1189_v16  ;;  %v631_v16 = vstv %s1198_s5 }
 0x3d2   :  { %v372_v19 = vsub.f32 1.0, %v371_v18  ;;  %861 = vmatpush.msra.mxu0 %v1732_v27 }
 0x3d4   :  { %v373_v20 = vmul.f32 %v1248_v17, %v372_v19  ;;  %862 = vmatpush.msra.mxu0 %v1737_v28 }
 0x3d6   :  { %v374_v21 = vadd.f32 %v1248_v17, %v373_v20  ;;  %863 = vmatpush.msra.mxu0 %v1745_v29 }
 0x3d8   :  { %v378_v34 = vsel %vm377_vm11, %v1248_v17, %v374_v21  ;;  %864 = vmatpush.msra.mxu0 %v1752_v31  ;;  %vm632_vm11 = vcmp.eq.s32.totalorder %v1761_v33, %v631_v16 }
 0x3d9   :  { %v383_v40 = vsel %vm380_vm12, %v382_v37, %v378_v34 }
 0x3da   :  { %v391_v44 = vmul.f32 %v389_v43, %v383_v40  ;;  %865 = vmatpush.msra.mxu0 %v1759_v32 }
 0x3dc   :  { %866 = vmatpush.msra.mxu0 %v1768_v35 }
 0x3de   :  { %867 = vmatpush.msra.mxu0 %v1775_v36 }
 0x3e0   :  { %868 = vmatpush.msra.mxu0 %v1783_v38 }
 0x437   :  { %v394_v41 = vpop.permute.xlu1 %393 }
 0x438   :  { %v396_v42 = vmul.f32 %v394_v41, %v383_v40 }
 0x43a   :  { %398 = vrot.lane.b32.xlu2 %v396_v42, %s1548_s4 }
 0x44e   :  { %v440_v36 = vpop.f32.mrf.mxu0 }
 0x494   :  { %v399_v45 = vpop.permute.xlu2 %398 }
 0x495   :  { %v1856_v46 = vadd.f32 %v399_v45, %v391_v44 }
 0x497   :  { %1249 = vtanh.f32 %v1856_v46 }
 0x49d   :  { %v1250_v47 = vpop.eup %1249 }
 0x49e   :  { %404 = vrot.lane.b32.xlu0 %v1250_v47, %s1549_s30 }
 0x510   :  { %v405_v48 = vpop.permute.xlu0 %404 }
 0x511   :  { %v407_v49 = vmul.f32 %v405_v48, %v383_v40 }
 0x513   :  { %409 = vrot.lane.b32.xlu1 %v407_v49, %s1548_s4 }
 0x585   :  { %v410_v50 = vpop.permute.xlu1 %409 }
 0x586   :  { %413 = vst.msk [vmem:[#allocation2] sm:$0x1] %vm412_vm13, %v410_v50  ;;  %1191 = vmatmul.msk.f32.vlgmr.msrb.gmra.mxu1 %vm159_vm0, %v410_v50  ;;  %1192 = vmatmul.msk.f32.vlgmr.msra.gmra.mxu2 %vm159_vm0, %v410_v50 }
 0x587   :  { %692 = vmatpush.msra.mxu2 %v1646_v0 }
 0x589   :  { %693 = vmatpush.msra.mxu2 %v1651_v1 }
 0x58b   :  { %694 = vmatpush.msra.mxu2 %v1660_v3 }
 0x58d   :  { %695 = vmatpush.msra.mxu2 %v1672_v6 }
 0x603   :  { %v462_v63 = vpop.f32.mrf.mxu1 }
 0x609   :  { %v482_v51 = vpop.f32.mrf.mxu2 }
 0x60a   :  { %v485_v59 = vperm.slane %v482_v51, 0 }
 0x60c   :  { %v486_v60 = vadd.f32 %v485_v59, %v1687_v11 }
 0x60e   :  { %1251 = vtanh.f32 %v486_v60 }
 0x614   :  { %v1252_v62 = vpop.eup %1251 }
 0x615   :  { %1193 = vmatpush.xpose.msk.msra.mxu1 %vm159_vm0, %v1252_v62 }
 0x618   :  { %1194 = vmatmul.msk.f32.vlgmr.msra.gmra.mxu1 %vm159_vm0, %v1691_v15 }
 0x619   :  { %672 = vmatpush.msrb.mxu1 %v1703_v23 }
 0x61b   :  { %673 = vmatpush.msrb.mxu1 %v1709_v24 }
 0x61d   :  { %674 = vmatpush.msrb.mxu1 %v1715_v25 }
 0x61f   :  { %675 = vmatpush.msrb.mxu1 %v1721_v26 }
 0x695   :  { %v508_v2 = vpop.f32.mrf.mxu1 }
 0x696   :  { %v511_v4 = vsel %vm288_vm1, %v508_v2, -inf }
 0x697   :  { %512 = vmax.xlane.f32.xlu2 %v511_v4 }
 0x70a   :  { %v513_v7 = vpop.xlane.xlu2 %512 }
 0x70b   :  { %v514_v8 = vsub.f32 %v508_v2, %v513_v7 }
 0x70d   :  { %v515_v10 = vmul.f32 1.442695, %v514_v8 }
 0x70f   :  { %1253 = vpow2.f32 %v515_v10 }
 0x715   :  { %v1254_v12 = vpop.eup %1253 }
 0x716   :  { %v517_v13 = vsel %vm288_vm1, %v1254_v12, 0.0 }
 0x717   :  { %518 = vadd.xlane.f32.xlu1 %v517_v13 }
 0x78a   :  { %v519_v17 = vpop.xlane.xlu1 %518 }
 0x78b   :  { %1255 = vrcp.f32 %v519_v17  ;;  %v531_v27 = vand.u32 2147483648, %v519_v17  ;;  %v529_v28 = vand.u32 2147483647, %v519_v17  ;;  %vm525_vm2 = vweird.f32 %v519_v17 }
 0x78d   :  { %v532_v31 = vor.u32 1.1754944e-38, %v531_v27  ;;  %vm530_vm5 = vcmp.eq.f32.partialorder %v529_v28, 8.507059e+37 }
 0x791   :  { %v1256_v18 = vpop.eup %1255 }
 0x792   :  { %v521_v19 = vmul.f32 %v1256_v18, %v519_v17  ;;  %vm526_vm15 = vweird.f32 %v1256_v18 }
 0x793   :  { %vm527_vm4 = vmor %vm525_vm2, %vm526_vm15 }
 0x794   :  { %v522_v20 = vsub.f32 1.0, %v521_v19 }
 0x796   :  { %v523_v21 = vmul.f32 %v1256_v18, %v522_v20 }
 0x798   :  { %v524_v29 = vadd.f32 %v1256_v18, %v523_v21 }
 0x79a   :  { %v528_v22 = vsel %vm527_vm4, %v1256_v18, %v524_v29 }
 0x79b   :  { %v533_v32 = vsel %vm530_vm5, %v532_v31, %v528_v22 }
 0x79c   :  { %v534_v30 = vmul.f32 %v1254_v12, %v533_v32 }
 0x79e   :  { %1195 = vmatmul.msk.f32.vlgmr.msrb.gmra.mxu2 %vm313_vm8, %v534_v30  ;;  %629 = vst.msk [vmem:[#allocation15 + $0x1] sm:$0x1] %vm288_vm1, %v534_v30 }
 0x79f   :  { %768 = vmatpush.msrb.mxu2 %v1681_v9 }
 0x821   :  { %v555_v35 = vpop.f32.mrf.mxu2 }
 0x822   :  { %559 = vrot.lane.b32.xlu0 %v555_v35, %s1548_s4 }
 0x894   :  { %v560_v38 = vpop.permute.xlu0 %559 }
 0x895   :  { %v562_v34 = vsel %vm159_vm0, %v440_v36, %v560_v38 }
 0x896   :  { %1196 = vmatmul.msk.f32.vlgmr.msra.gmra.mxu3 %vm192_vm3, %v562_v34 }
 0x897   :  { %1004 = vmatpush.msra.mxu3 %v1807_v52 }
 0x899   :  { %1005 = vmatpush.msra.mxu3 %v1809_v53 }
 0x89b   :  { %1006 = vmatpush.msra.mxu3 %v1812_v54 }
 0x89d   :  { %1007 = vmatpush.msra.mxu3 %v1815_v55 }
 0x89f   :  { %1008 = vmatpush.msra.mxu3 %v1818_v56 }
 0x8a1   :  { %1009 = vmatpush.msra.mxu3 %v1821_v57 }
 0x8a3   :  { %1010 = vmatpush.msra.mxu3 %v1824_v58 }
 0x8a5   :  { %1011 = vmatpush.msra.mxu3 %v1829_v61 }
 0x919   :  { %v583_v37 = vpop.f32.mrf.mxu3 }
 0x91a   :  { %v584_v40 = vadd.f32 %v583_v37, %v462_v63 }
 0x91c   :  { %v586_v41 = vadd.f32 %v584_v40, %v1851_v5 }
 0x91e   :  { %1257 = vtanh.f32 %v586_v41  ;;  %v1197_v53 = vmul.f32 -1.442695, %v586_v41 }
 0x920   :  { %1259 = vpow2.f32 %v1197_v53 }
 0x924   :  { %v1258_v52 = vpop.eup %1257 }
 0x925   :  { %609 = vrot.lane.b32.xlu0 %v1258_v52, %s1549_s30 }
 0x926   :  { %v1260_v54 = vpop.eup %1259 }
 0x927   :  { %v590_v55 = vadd.f32 1.0, %v1260_v54 }
 0x929   :  { %1261 = vrcp.f32 %v590_v55  ;;  %v602_v61 = vand.u32 2147483648, %v590_v55  ;;  %vm596_vm7 = vweird.f32 %v590_v55  ;;  %v600_v44 = vand.u32 2147483647, %v590_v55 }
 0x92b   :  { %v603_v47 = vor.u32 1.1754944e-38, %v602_v61  ;;  %vm601_vm10 = vcmp.eq.f32.partialorder %v600_v44, 8.507059e+37 }
 0x92f   :  { %v1262_v56 = vpop.eup %1261 }
 0x930   :  { %v592_v42 = vmul.f32 %v1262_v56, %v590_v55  ;;  %vm597_vm6 = vweird.f32 %v1262_v56 }
 0x931   :  { %vm598_vm9 = vmor %vm596_vm7, %vm597_vm6 }
 0x932   :  { %v593_v57 = vsub.f32 1.0, %v592_v42 }
 0x934   :  { %v594_v43 = vmul.f32 %v1262_v56, %v593_v57 }
 0x936   :  { %v595_v58 = vadd.f32 %v1262_v56, %v594_v43 }
 0x938   :  { %v599_v45 = vsel %vm598_vm9, %v1262_v56, %v595_v58 }
 0x939   :  { %v604_v49 = vsel %vm601_vm10, %v603_v47, %v599_v45 }
 0x93a   :  { %v607_v51 = vmul.f32 %v604_v49, %v1856_v46 }
 0x997   :  { %v610_v48 = vpop.permute.xlu0 %609 }
 0x998   :  { %v612_v50 = vmul.f32 %v610_v48, %v604_v49 }
 0x99a   :  { %614 = vrot.lane.b32.xlu0 %v612_v50, %s1548_s4 }
 0xa0c   :  { %v615_v59 = vpop.permute.xlu0 %614 }
 0xa0d   :  { %v1907_v60 = vadd.f32 %v615_v59, %v607_v51 }
 0xa0f   :  { %1263 = vtanh.f32 %v1907_v60 }
 0xa15   :  { %v1264_v62 = vpop.eup %1263 }
 0xa16   :  { %620 = vrot.lane.b32.xlu2 %v1264_v62, %s1549_s30 }
 0xa70   :  { %v621_v63 = vpop.permute.xlu2 %620 }
 0xa71   :  { %v623_v2 = vmul.f32 %v621_v63, %v604_v49 }
 0xa73   :  { %625 = vrot.lane.b32.xlu0 %v623_v2, %s1548_s4 }
 0xae5   :  { %v626_v4 = vpop.permute.xlu0 %625 }
 0xae6   :  { %628 = vst.msk [vmem:[#allocation2 + $0x1] sm:$0x1] %vm412_vm13, %v626_v4  ;;  %1201 = vmatmul.msk.f32.vlgmr.msrb.gmra.mxu1 %vm159_vm0, %v626_v4  ;;  %1202 = vmatmul.msk.f32.vlgmr.msra.gmra.mxu2 %vm159_vm0, %v626_v4 }
 0xae7   :  { %907 = vmatpush.msra.mxu2 %v1646_v0 }
 0xae9   :  { %908 = vmatpush.msra.mxu2 %v1651_v1 }
 0xaeb   :  { %909 = vmatpush.msra.mxu2 %v1660_v3 }
 0xaed   :  { %910 = vmatpush.msra.mxu2 %v1672_v6 }
 0xb63   :  { %v677_v0 = vpop.f32.mrf.mxu1 }
 0xb69   :  { %v697_v46 = vpop.f32.mrf.mxu2 }
 0xb6a   :  { %v700_v7 = vperm.slane %v697_v46, 0 }
 0xb6c   :  { %v701_v8 = vadd.f32 %v700_v7, %v1687_v11 }
 0xb6e   :  { %1265 = vtanh.f32 %v701_v8 }
 0xb74   :  { %v1266_v10 = vpop.eup %1265 }
 0xb75   :  { %1203 = vmatpush.xpose.msk.msra.mxu1 %vm159_vm0, %v1266_v10 }
 0xb78   :  { %1204 = vmatmul.msk.f32.vlgmr.msra.gmra.mxu1 %vm159_vm0, %v1691_v15 }
 0xb79   :  { %887 = vmatpush.msrb.mxu1 %v1703_v23 }
 0xb7b   :  { %888 = vmatpush.msrb.mxu1 %v1709_v24  ;;  %v1199_v24 = vsel %vm632_vm11, 1.0, %v1547_v39 }
 0xb7c   :  { %1200 = vmatmul.msk.f32.vlgmr.msrb.gmra.mxu0 %vm192_vm3, %v1199_v24 }
 0xb7d   :  { %889 = vmatpush.msrb.mxu1 %v1715_v25 }
 0xb7f   :  { %890 = vmatpush.msrb.mxu1 %v1721_v26 }
 0xbf5   :  { %v723_v1 = vpop.f32.mrf.mxu1 }
 0xbf6   :  { %v726_v3 = vsel %vm288_vm1, %v723_v1, -inf }
 0xbf7   :  { %727 = vmax.xlane.f32.xlu1 %v726_v3 }
 0xbf9   :  { %v655_v30 = vpop.f32.mrf.mxu0 }
 0xc6a   :  { %v728_v6 = vpop.xlane.xlu1 %727 }
 0xc6b   :  { %v729_v12 = vsub.f32 %v723_v1, %v728_v6 }
 0xc6d   :  { %v730_v13 = vmul.f32 1.442695, %v729_v12 }
 0xc6f   :  { %1267 = vpow2.f32 %v730_v13 }
 0xc75   :  { %v1268_v14 = vpop.eup %1267 }
 0xc76   :  { %v732_v23 = vsel %vm288_vm1, %v1268_v14, 0.0 }
 0xc77   :  { %733 = vadd.xlane.f32.xlu0 %v732_v23 }
 0xcea   :  { %v734_v25 = vpop.xlane.xlu0 %733 }
 0xceb   :  { %1269 = vrcp.f32 %v734_v25  ;;  %v746_v19 = vand.u32 2147483648, %v734_v25  ;;  %v744_v27 = vand.u32 2147483647, %v734_v25  ;;  %vm740_vm14 = vweird.f32 %v734_v25 }
 0xced   :  { %v747_v28 = vor.u32 1.1754944e-38, %v746_v19  ;;  %vm745_vm2 = vcmp.eq.f32.partialorder %v744_v27, 8.507059e+37 }
 0xcf1   :  { %v1270_v26 = vpop.eup %1269 }
 0xcf2   :  { %v736_v17 = vmul.f32 %v1270_v26, %v734_v25  ;;  %vm741_vm12 = vweird.f32 %v1270_v26 }
 0xcf3   :  { %vm742_vm15 = vmor %vm740_vm14, %vm741_vm12 }
 0xcf4   :  { %v737_v18 = vsub.f32 1.0, %v736_v17 }
 0xcf6   :  { %v738_v20 = vmul.f32 %v1270_v26, %v737_v18 }
 0xcf8   :  { %v739_v21 = vadd.f32 %v1270_v26, %v738_v20 }
 0xcfa   :  { %v743_v29 = vsel %vm742_vm15, %v1270_v26, %v739_v21 }
 0xcfb   :  { %v748_v31 = vsel %vm745_vm2, %v747_v28, %v743_v29  ;;  %vm1097_vm2 = vcmask 519168  }
 0xcfc   :  { %v749_v22 = vmul.f32 %v1268_v14, %v748_v31 }
 0xcfe   :  { %1205 = vmatmul.msk.f32.vlgmr.msrb.gmra.mxu2 %vm313_vm8, %v749_v22  ;;  %844 = vst.msk [vmem:[#allocation15 + $0x2] sm:$0x1] %vm288_vm1, %v749_v22 }
 0xcff   :  { %983 = vmatpush.msrb.mxu2 %v1681_v9 }
 0xd81   :  { %v770_v32 = vpop.f32.mrf.mxu2 }
 0xd82   :  { %774 = vrot.lane.b32.xlu1 %v770_v32, %s1548_s4 }
 0xdf4   :  { %v775_v35 = vpop.permute.xlu1 %774 }
 0xdf5   :  { %v777_v36 = vsel %vm159_vm0, %v655_v30, %v775_v35 }
 0xdf6   :  { %1206 = vmatmul.msk.f32.vlgmr.msrb.gmra.mxu3 %vm192_vm3, %v777_v36 }
 0xe79   :  { %v798_v38 = vpop.f32.mrf.mxu3 }
 0xe7a   :  { %v799_v34 = vadd.f32 %v798_v38, %v677_v0 }
 0xe7c   :  { %v801_v37 = vadd.f32 %v799_v34, %v1851_v5 }
 0xe7e   :  { %1271 = vtanh.f32 %v801_v37  ;;  %v1207_v41 = vmul.f32 -1.442695, %v801_v37 }
 0xe80   :  { %1273 = vpow2.f32 %v1207_v41 }
 0xe84   :  { %v1272_v40 = vpop.eup %1271 }
 0xe85   :  { %824 = vrot.lane.b32.xlu2 %v1272_v40, %s1549_s30 }
 0xe86   :  { %v1274_v9 = vpop.eup %1273 }
 0xe87   :  { %v805_v52 = vadd.f32 1.0, %v1274_v9 }
 0xe89   :  { %1275 = vrcp.f32 %v805_v52  ;;  %v817_v57 = vand.u32 2147483648, %v805_v52  ;;  %vm811_vm5 = vweird.f32 %v805_v52  ;;  %v815_v43 = vand.u32 2147483647, %v805_v52 }
 0xe8b   :  { %v818_v61 = vor.u32 1.1754944e-38, %v817_v57  ;;  %vm816_vm7 = vcmp.eq.f32.partialorder %v815_v43, 8.507059e+37 }
 0xe8f   :  { %v1276_v53 = vpop.eup %1275 }
 0xe90   :  { %v807_v54 = vmul.f32 %v1276_v53, %v805_v52  ;;  %vm812_vm4 = vweird.f32 %v1276_v53 }
 0xe91   :  { %vm813_vm6 = vmor %vm811_vm5, %vm812_vm4 }
 0xe92   :  { %v808_v55 = vsub.f32 1.0, %v807_v54 }
 0xe94   :  { %v809_v56 = vmul.f32 %v1276_v53, %v808_v55 }
 0xe96   :  { %v810_v42 = vadd.f32 %v1276_v53, %v809_v56 }
 0xe98   :  { %v814_v58 = vsel %vm813_vm6, %v1276_v53, %v810_v42 }
 0xe99   :  { %v819_v45 = vsel %vm816_vm7, %v818_v61, %v814_v58 }
 0xe9a   :  { %v822_v48 = vmul.f32 %v819_v45, %v1907_v60 }
 0xedf   :  { %v825_v44 = vpop.permute.xlu2 %824 }
 0xee0   :  { %v827_v47 = vmul.f32 %v825_v44, %v819_v45 }
 0xee2   :  { %829 = vrot.lane.b32.xlu2 %v827_v47, %s1548_s4  ;;  %v1069_v47 = vld [vmem:[#allocation11 + $0x10] sm:$0xff] }
 0xf3c   :  { %v830_v49 = vpop.permute.xlu2 %829 }
 0xf3d   :  { %v1942_v50 = vadd.f32 %v830_v49, %v822_v48  ;;  %v1068_v48 = vld [vmem:[#allocation11 + $0x8] sm:$0xff]  ;;  %v1067_v49 = vld [vmem:[#allocation11] sm:$0xff] }
 0xf3f   :  { %1277 = vtanh.f32 %v1942_v50 }
 0xf45   :  { %v1278_v51 = vpop.eup %1277 }
 0xf46   :  { %835 = vrot.lane.b32.xlu2 %v1278_v51, %s1549_s30 }
 0xfa0   :  { %v836_v59 = vpop.permute.xlu2 %835 }
 0xfa1   :  { %v838_v62 = vmul.f32 %v836_v59, %v819_v45  ;;  %v1070_v45 = vld [vmem:[#allocation11 + $0x18] sm:$0xff]  ;;  %v1236_v59 = vld [vmem:[#allocation13 + $0x1] ss:$0 sm:$0xff] }
 0xfa2   :  { %1089 = vmatpush.msrb.mxu0 %v1070_v45 }
 0xfa3   :  { %840 = vrot.lane.b32.xlu1 %v838_v62, %s1548_s4 }
 0xfa4   :  { %1090 = vmatpush.msrb.mxu0 %v1069_v47 }
 0xfa6   :  { %1091 = vmatpush.msrb.mxu0 %v1068_v48 }
 0xfa8   :  { %1092 = vmatpush.msrb.mxu0 %v1067_v49 }
0x1015   :  { %v841_v63 = vpop.permute.xlu1 %840 }
0x1016   :  { %843 = vst.msk [vmem:[#allocation2 + $0x2] sm:$0x1] %vm412_vm13, %v841_v63  ;;  %1211 = vmatmul.msk.f32.vlgmr.msrb.gmra.mxu1 %vm159_vm0, %v841_v63  ;;  %1212 = vmatmul.msk.f32.vlgmr.msra.gmra.mxu2 %vm159_vm0, %v841_v63 }
0x1093   :  { %v892_v7 = vpop.f32.mrf.mxu1 }
0x1099   :  { %v912_v60 = vpop.f32.mrf.mxu2 }
0x109a   :  { %v915_v2 = vperm.slane %v912_v60, 0 }
0x109c   :  { %v916_v4 = vadd.f32 %v915_v2, %v1687_v11  ;;  %v846_v11 = vstv %s1208_s14 }
0x109d   :  { %vm847_vm9 = vcmp.eq.s32.totalorder %v1761_v33, %v846_v11 }
0x109e   :  { %1279 = vtanh.f32 %v916_v4  ;;  %v1209_v13 = vsel %vm847_vm9, 1.0, %v1547_v39 }
0x109f   :  { %1210 = vmatmul.msk.f32.vlgmr.msra.gmra.mxu0 %vm192_vm3, %v1209_v13 }
0x10a4   :  { %v1280_v46 = vpop.eup %1279 }
0x10a5   :  { %1213 = vmatpush.xpose.msk.msra.mxu1 %vm159_vm0, %v1280_v46 }
0x10a8   :  { %1214 = vmatmul.msk.f32.vlgmr.msra.gmra.mxu1 %vm159_vm0, %v1691_v15 }
0x111c   :  { %v870_v27 = vpop.f32.mrf.mxu0 }
0x1125   :  { %v938_v8 = vpop.f32.mrf.mxu1 }
0x1126   :  { %v941_v10 = vsel %vm288_vm1, %v938_v8, -inf }
0x1127   :  { %942 = vmax.xlane.f32.xlu2 %v941_v10 }
0x119a   :  { %v943_v0 = vpop.xlane.xlu2 %942 }
0x119b   :  { %v944_v1 = vsub.f32 %v938_v8, %v943_v0 }
0x119d   :  { %v945_v3 = vmul.f32 1.442695, %v944_v1 }
0x119f   :  { %1281 = vpow2.f32 %v945_v3 }
0x11a5   :  { %v1282_v6 = vpop.eup %1281 }
0x11a6   :  { %v947_v12 = vsel %vm288_vm1, %v1282_v6, 0.0 }
0x11a7   :  { %948 = vadd.xlane.f32.xlu1 %v947_v12 }
0x121a   :  { %v949_v15 = vpop.xlane.xlu1 %948 }
0x121b   :  { %1283 = vrcp.f32 %v949_v15  ;;  %v961_v24 = vand.u32 2147483648, %v949_v15  ;;  %v959_v26 = vand.u32 2147483647, %v949_v15  ;;  %vm955_vm11 = vweird.f32 %v949_v15 }
0x121d   :  { %v962_v18 = vor.u32 1.1754944e-38, %v961_v24  ;;  %vm960_vm14 = vcmp.eq.f32.partialorder %v959_v26, 8.507059e+37 }
0x1221   :  { %v1284_v14 = vpop.eup %1283 }
0x1222   :  { %v951_v23 = vmul.f32 %v1284_v14, %v949_v15  ;;  %vm956_vm10 = vweird.f32 %v1284_v14 }
0x1223   :  { %vm957_vm12 = vmor %vm955_vm11, %vm956_vm10 }
0x1224   :  { %v952_v16 = vsub.f32 1.0, %v951_v23 }
0x1226   :  { %v953_v25 = vmul.f32 %v1284_v14, %v952_v16 }
0x1228   :  { %v954_v17 = vadd.f32 %v1284_v14, %v953_v25 }
0x122a   :  { %v958_v19 = vsel %vm957_vm12, %v1284_v14, %v954_v17 }
0x122b   :  { %v963_v33 = vsel %vm960_vm14, %v962_v18, %v958_v19 }
0x122c   :  { %v964_v20 = vmul.f32 %v1282_v6, %v963_v33 }
0x122e   :  { %1215 = vmatmul.msk.f32.vlgmr.msrb.gmra.mxu2 %vm313_vm8, %v964_v20  ;;  %1059 = vst.msk [vmem:[#allocation15 + $0x3] sm:$0x1] %vm288_vm1, %v964_v20 }
0x122f   :  { %1132 = dma.vmem_to_hbm [thread:$0]  %s1128_s1, 64, %s1130_s9, [#allocation16]  }
0x12b1   :  { %v985_v39 = vpop.f32.mrf.mxu2 }
0x12b2   :  { %989 = vrot.lane.b32.xlu0 %v985_v39, %s1548_s4 }
0x1324   :  { %v990_v21 = vpop.permute.xlu0 %989 }
0x1325   :  { %v992_v28 = vsel %vm159_vm0, %v870_v27, %v990_v21 }
0x1326   :  { %1216 = vmatmul.msk.f32.vlgmr.msra.gmra.mxu3 %vm192_vm3, %v992_v28 }
0x13a9   :  { %v1013_v29 = vpop.f32.mrf.mxu3 }
0x13aa   :  { %v1014_v31 = vadd.f32 %v1013_v29, %v892_v7 }
0x13ac   :  { %v1016_v22 = vadd.f32 %v1014_v31, %v1851_v5 }
0x13ae   :  { %1285 = vtanh.f32 %v1016_v22  ;;  %v1217_v30 = vmul.f32 -1.442695, %v1016_v22 }
0x13b0   :  { %1287 = vpow2.f32 %v1217_v30 }
0x13b4   :  { %v1286_v32 = vpop.eup %1285 }
0x13b5   :  { %1039 = vrot.lane.b32.xlu0 %v1286_v32, %s1549_s30 }
0x13b6   :  { %v1288_v35 = vpop.eup %1287 }
0x13b7   :  { %v1020_v36 = vadd.f32 1.0, %v1288_v35 }
0x13b9   :  { %1289 = vrcp.f32 %v1020_v36  ;;  %v1032_v9 = vand.u32 2147483648, %v1020_v36  ;;  %vm1026_vm3 = vweird.f32 %v1020_v36  ;;  %v1030_v52 = vand.u32 2147483647, %v1020_v36 }
0x13bb   :  { %v1033_v53 = vor.u32 1.1754944e-38, %v1032_v9  ;;  %vm1031_vm15 = vcmp.eq.f32.partialorder %v1030_v52, 8.507059e+37 }
0x13bf   :  { %v1290_v38 = vpop.eup %1289 }
0x13c0   :  { %v1022_v34 = vmul.f32 %v1290_v38, %v1020_v36  ;;  %vm1027_vm1 = vweird.f32 %v1290_v38 }
0x13c1   :  { %vm1028_vm8 = vmor %vm1026_vm3, %vm1027_vm1 }
0x13c2   :  { %v1023_v37 = vsub.f32 1.0, %v1022_v34 }
0x13c4   :  { %v1024_v40 = vmul.f32 %v1290_v38, %v1023_v37 }
0x13c6   :  { %v1025_v41 = vadd.f32 %v1290_v38, %v1024_v40 }
0x13c8   :  { %v1029_v5 = vsel %vm1028_vm8, %v1290_v38, %v1025_v41 }
0x13c9   :  { %v1034_v55 = vsel %vm1031_vm15, %v1033_v53, %v1029_v5 }
0x13ca   :  { %v1037_v42 = vmul.f32 %v1034_v55, %v1942_v50 }
0x1427   :  { %v1040_v54 = vpop.permute.xlu0 %1039 }
0x1428   :  { %v1042_v56 = vmul.f32 %v1040_v54, %v1034_v55 }
0x142a   :  { %1044 = vrot.lane.b32.xlu0 %v1042_v56, %s1548_s4 }
0x149c   :  { %v1045_v57 = vpop.permute.xlu0 %1044 }
0x149d   :  { %v1047_v43 = vadd.f32 %v1045_v57, %v1037_v42 }
0x149f   :  { %1291 = vtanh.f32 %v1047_v43 }
0x14a5   :  { %v1292_v58 = vpop.eup %1291 }
0x14a6   :  { %1050 = vrot.lane.b32.xlu0 %v1292_v58, %s1549_s30 }
0x1518   :  { %v1051_v61 = vpop.permute.xlu0 %1050 }
0x1519   :  { %v1053_v44 = vmul.f32 %v1051_v61, %v1034_v55 }
0x151b   :  { %1055 = vrot.lane.b32.xlu2 %v1053_v44, %s1548_s4 }
0x1575   :  { %v1056_v51 = vpop.permute.xlu2 %1055 }
0x1576   :  { %1058 = vst.msk [vmem:[#allocation2 + $0x3] sm:$0x1] %vm412_vm13, %v1056_v51 }
0x1577   :  { %1060 = vst.msk [vmem:[#allocation17] sm:$0x1] %vm412_vm13, %v1056_v51 }
0x1578   :  { %1143 = dma.vmem_to_hbm [thread:$0]  %s1139_s19, 16, %s1141_s2, [#allocation16]  }
0x157d   :  { %v1066_v50 = vld [vmem:[#allocation2] sm:$0xf] }
0x157e   :  { %1218 = vmatmul.msk.f32.vlgmr.msrb.gmra.mxu0 %vm159_vm0, %v1066_v50 }
0x15fb   :  { %v1094_v62 = vpop.f32.mrf.mxu0 }
0x15fc   :  { %v1095_v63 = vadd.f32 %v1236_v59, %v1094_v62 }
0x15fe   :  { %v1098_v60 = vsel %vm1097_vm2, %v1095_v63, -inf }
0x15ff   :  { %1099 = vmax.xlane.f32.xlu1 %v1098_v60 }
0x1618   :  { %1062 = vrot.lane.b32.xlu1 %v1047_v43, %s1550_s15 }
0x1672   :  { %v1100_v2 = vpop.xlane.xlu1 %1099 }
0x1673   :  { %v1101_v4 = vsub.f32 %v1095_v63, %v1100_v2 }
0x1675   :  { %v1102_v46 = vmul.f32 1.442695, %v1101_v4 }
0x1677   :  { %1293 = vpow2.f32 %v1102_v46 }
0x167d   :  { %v1294_v7 = vpop.eup %1293 }
0x167e   :  { %v1104_v8 = vsel %vm1097_vm2, %v1294_v7, 0.0 }
0x167f   :  { %1105 = vadd.xlane.f32.xlu0 %v1104_v8 }
0x168a   :  { %v1063_v10 = vpop.permute.xlu1 %1062 }
0x168b   :  { %1065 = vst.msk [vmem:[#allocation18] sm:$0x1] %vm412_vm13, %v1063_v10 }
0x168c   :  { %1154 = dma.vmem_to_hbm [thread:$0]  %s1150_s24, 16, %s1152_s23, [#allocation19]  }
0x16f2   :  { %v1106_v0 = vpop.xlane.xlu0 %1105 }
0x16f3   :  { %1295 = vlog2.f32 %v1106_v0 }
0x16f9   :  { %v1296_v1 = vpop.eup %1295 }
0x16fa   :  { %v1108_v3 = vmul.f32 0.6931472, %v1296_v1 }
0x16fc   :  { %v1109_v6 = vsub.f32 %v1101_v4, %v1108_v3 }
0x16fe   :  { %1110 = vst.msk [vmem:[#allocation14] sm:$0xf] %vm1097_vm2, %v1109_v6 }
0x16ff   :  { %1121 = dma.vmem_to_hbm [thread:$0]  %s1117_s12, 64, %s1119_s27, [#allocation5]  }
0x1700   :  { %1533 = dma.done.wait [#allocation5], 64  }
0x1701   :  { %1534 = vsyncadd [#allocation5], 4294967232 }
0x1702   :  { %1535 = dma.done.wait [#allocation16], 80  }
0x1703   :  { %1536 = vsyncadd [#allocation16], 4294967216 }
0x1704   :  { %1537 = dma.done.wait [#allocation19], 16  }
0x1705   :  { %1538 = vsyncadd [#allocation19], 4294967280 }
0x1706   :  { %1171 = vsyncpa [#allocation4], 1 }
0x1707   :  { %1172 = vsyncpa [#allocation9], 1 }
0x1708   :  { %1173 = vsyncpa [#allocation12], 1 }
0x1709   :  { %1174 = vsyncpa [#allocation5], 1 }
0x170a   :  { %1175 = vsyncpa [#allocation16], 1 }
0x170b   :  { %1176 = vsyncpa [#allocation19], 1 }
0x170c   :  { %1177 = vsyncpa [#allocation6], 1 }

</bundles_post_ra>
